<compile_context>
chip_gen: v6e
topology: v6e:2x2x1
jax: 0.10.0
libtpu: 0.0.40
codegen_flags: <defaults>
</compile_context>

<pallas_src>
import math
import functools

import jax
import jax.numpy as jnp
from jax import lax
from jax.experimental import pallas as pl
from jax.experimental.pallas import tpu as pltpu


# ----------------------------------------------------------------------------
# helpers
# ----------------------------------------------------------------------------
def _round_up(v, m):
    return (v + m - 1) // m * m


def _pad2(a, rows, cols):
    if a.shape[0] == rows and a.shape[1] == cols:
        return a
    return jnp.pad(a, ((0, rows - a.shape[0]), (0, cols - a.shape[1])))


# ----------------------------------------------------------------------------
# Pallas kernel (factory over the optional bias / fused-LoRA epilogue)
# ----------------------------------------------------------------------------
def _make_linear_kernel(*, has_bias, has_lora, lora_scaling):
    def _body(x_ref, w_ref, h_ref, bl_ref, b_ref, o_ref, acc_ref):
        k = pl.program_id(2)

        @pl.when(k == 0)
        def _init():
            acc_ref[...] = jnp.zeros_like(acc_ref)

        # x_ref: (tm, tk) bf16, w_ref: (tn, tk) bf16 -> (tm, tn) f32 accumulate.
        # Contract the K axes directly (no transpose of the weight tile).
        acc_ref[...] += lax.dot_general(
            x_ref[...], w_ref[...],
            dimension_numbers=(((1,), (1,)), ((), ())),
            preferred_element_type=jnp.float32)

        @pl.when(k == pl.num_programs(2) - 1)
        def _finalize():
            out = acc_ref[...]
            if h_ref is not None:
                # Fused LoRA epilogue: + scaling * (x @ A^T) @ B^T for this tile.
                out = out + lora_scaling * lax.dot_general(
                    h_ref[...], bl_ref[...],
                    dimension_numbers=(((1,), (1,)), ((), ())),
                    preferred_element_type=jnp.float32)
            if b_ref is not None:
                out = out + b_ref[...]
            o_ref[...] = out.astype(o_ref.dtype)

    if has_lora and has_bias:
        def kernel(x_ref, w_ref, h_ref, bl_ref, b_ref, o_ref, acc_ref):
            _body(x_ref, w_ref, h_ref, bl_ref, b_ref, o_ref, acc_ref)
    elif has_lora:
        def kernel(x_ref, w_ref, h_ref, bl_ref, o_ref, acc_ref):
            _body(x_ref, w_ref, h_ref, bl_ref, None, o_ref, acc_ref)
    elif has_bias:
        def kernel(x_ref, w_ref, b_ref, o_ref, acc_ref):
            _body(x_ref, w_ref, None, None, b_ref, o_ref, acc_ref)
    else:
        def kernel(x_ref, w_ref, o_ref, acc_ref):
            _body(x_ref, w_ref, None, None, None, o_ref, acc_ref)
    return kernel


def _pallas_matmul_nt(x, w, *, bias=None, lora_h=None, lora_B=None,
                      lora_scaling=1.0, out_dtype=jnp.float32,
                      tm=256, tn=256, tk=512):
    """x[M,K] @ w[N,K]^T (+ fused lora_scaling*(lora_h @ lora_B^T)) (+ bias) -> [M,N]."""
    M, K = x.shape
    N, K2 = w.shape
    assert K == K2, (K, K2)
    has_bias = bias is not None
    has_lora = lora_h is not None

    # Clamp tiles to (padded) full dims; keep lane dims multiples of 128 and
    # sublane dims multiples of 16 (bf16 packing), tn/tk multiples of 256 by
    # default to fill the 256x256 MXU on v6e/v7x (128-multiples fine on v5e).
    tm = min(tm, _round_up(M, 16))
    tn = min(tn, _round_up(N, 128))
    tk = min(tk, _round_up(K, 128))
    Mp, Np, Kp = _round_up(M, tm), _round_up(N, tn), _round_up(K, tk)

    # bf16 operands for the MXU; zero-padding along K is mathematically inert.
    # TODO(synk): in a real model, store weights pre-padded / pre-cast to bf16
    # once at init instead of per-call.
    xb = _pad2(x.astype(jnp.bfloat16), Mp, Kp)
    wb = _pad2(w.astype(jnp.bfloat16), Np, Kp)

    in_specs = [
        pl.BlockSpec((tm, tk), lambda i, j, k: (i, k)),
        pl.BlockSpec((tn, tk), lambda i, j, k: (j, k)),
    ]
    args = [xb, wb]

    if has_lora:
        r = lora_h.shape[1]
        rp = _round_up(r, 128)
        hb = _pad2(lora_h.astype(jnp.bfloat16), Mp, rp)
        bb = _pad2(lora_B.astype(jnp.bfloat16), Np, rp)
        in_specs += [
            pl.BlockSpec((tm, rp), lambda i, j, k: (i, 0)),
            pl.BlockSpec((tn, rp), lambda i, j, k: (j, 0)),
        ]
        args += [hb, bb]

    if has_bias:
        b2 = _pad2(bias.astype(jnp.float32).reshape(1, N), 1, Np)
        in_specs += [pl.BlockSpec((1, tn), lambda i, j, k: (0, j))]
        args += [b2]

    kernel = _make_linear_kernel(has_bias=has_bias, has_lora=has_lora,
                                 lora_scaling=float(lora_scaling))

    out = pl.pallas_call(
        kernel,
        out_shape=jax.ShapeDtypeStruct((Mp, Np), out_dtype),
        grid=(Mp // tm, Np // tn, Kp // tk),
        in_specs=in_specs,
        out_specs=pl.BlockSpec((tm, tn), lambda i, j, k: (i, j)),
        scratch_shapes=[pltpu.VMEM((tm, tn), jnp.float32)],
        compiler_params=pltpu.CompilerParams(
            dimension_semantics=("parallel", "parallel", "arbitrary")),
    )(*args)

    if (Mp, Np) != (M, N):
        out = out[:M, :N]
    return out


# ----------------------------------------------------------------------------
# LoRALinear forward
# ----------------------------------------------------------------------------
def lora_linear(x, params, *, lora_enabled=False, tm=256, tn=256, tk=512):
    """Pallas LoRALinear.forward.

    params: {"weight": [N,K], "bias": [N] or None,
             "lora_A": [r,K], "lora_B": [N,r], "lora_alpha": float}
    """
    weight = params["weight"]
    bias = params.get("bias")
    lead = x.shape[:-1]
    K = x.shape[-1]
    N = weight.shape[0]
    x2d = x.reshape(-1, K)
    out_dtype = x.dtype

    lora_A = params.get("lora_A")
    lora_rank = 0 if lora_A is None else lora_A.shape[0]

    if lora_enabled and lora_rank > 0:
        # rank projection h = x @ A^T (tiny N; own tiled kernel, bf16 output)
        h = _pallas_matmul_nt(x2d, lora_A, out_dtype=jnp.bfloat16,
                              tm=tm, tn=tn, tk=tk)
        scaling = params.get("lora_alpha", 1.0) / lora_rank
        out = _pallas_matmul_nt(x2d, weight, bias=bias,
                                lora_h=h, lora_B=params["lora_B"],
                                lora_scaling=scaling, out_dtype=out_dtype,
                                tm=tm, tn=tn, tk=tk)
    else:
        out = _pallas_matmul_nt(x2d, weight, bias=bias, out_dtype=out_dtype,
                                tm=tm, tn=tn, tk=tk)
    return out.reshape(*lead, N)


# ----------------------------------------------------------------------------
# Pure-JAX reference (same bf16 operand rounding, f32 accumulation)
# ----------------------------------------------------------------------------
def lora_linear_ref(x, params, *, lora_enabled=False):
    hi = lax.Precision.HIGHEST
    rnd = lambda a: a.astype(jnp.bfloat16).astype(jnp.float32)
    xb = rnd(x)
    out = jnp.einsum("...k,nk->...n", xb, rnd(params["weight"]), precision=hi)
    if params.get("bias") is not None:
        out = out + params["bias"].astype(jnp.float32)
    lora_A = params.get("lora_A")
    if lora_enabled and lora_A is not None and lora_A.shape[0] > 0:
        h = jnp.einsum("...k,rk->...r", xb, rnd(lora_A), precision=hi)
        h = rnd(h)  # the kernel hands h to the fused B-matmul in bf16
        scaling = params.get("lora_alpha", 1.0) / lora_A.shape[0]
        out = out + scaling * jnp.einsum("...r,nr->...n", h,
                                         rnd(params["lora_B"]), precision=hi)
    return out.astype(x.dtype)


# ----------------------------------------------------------------------------
# init helpers (match nn.init.xavier_uniform_ / kaiming_uniform_(a=sqrt(5)))
# ----------------------------------------------------------------------------
def xavier_uniform(key, out_features, in_features):
    bound = math.sqrt(6.0 / (in_features + out_features))
    return jax.random.uniform(key, (out_features, in_features),
                              minval=-bound, maxval=bound, dtype=jnp.float32)


def kaiming_uniform_a5(key, out_features, in_features):
    bound = 1.0 / math.sqrt(in_features)   # gain=sqrt(2/(1+5)) -> bound=1/sqrt(fan_in)
    return jax.random.uniform(key, (out_features, in_features),
                              minval=-bound, maxval=bound, dtype=jnp.float32)


# ----------------------------------------------------------------------------
if __name__ == "__main__":
    root = jax.random.PRNGKey(0)
    keys = jax.random.split(root, 10)

    # --- Config 1: module defaults (lora_enabled=False, bias=False) ----------
    batch, seq, in_features, out_features, lora_rank = 2, 256, 1024, 512, 16
    x1 = jax.random.normal(keys[0], (batch, seq, in_features), dtype=jnp.float32)
    params1 = {
        "weight": xavier_uniform(keys[1], out_features, in_features),
        "bias": None,
        "lora_A": kaiming_uniform_a5(keys[2], lora_rank, in_features),
        "lora_B": jnp.zeros((out_features, lora_rank), jnp.float32),
        "lora_alpha": 1.0,
    }
    out1 = jax.block_until_ready(lora_linear(x1, params1, lora_enabled=False))
    ref1 = lora_linear_ref(x1, params1, lora_enabled=False)
    assert out1.shape == (batch, seq, out_features)
    assert jnp.allclose(out1, ref1, rtol=2e-2, atol=2e-2), "config-1 mismatch"

    # --- Config 2: LoRA enabled + bias, odd (padded) shapes -------------------
    # (lora_B / bias set to random values to mimic a trained state and actually
    #  exercise the fused LoRA + bias epilogue; the module zero-inits them.)
    b2, s2, in2, out2, r2 = 2, 8, 96, 80, 4
    x2 = jax.random.normal(keys[3], (b2, s2, in2), dtype=jnp.float32)
    params2 = {
        "weight": xavier_uniform(keys[4], out2, in2),
        "bias": 0.1 * jax.random.normal(keys[5], (out2,), dtype=jnp.float32),
        "lora_A": kaiming_uniform_a5(keys[6], r2, in2),
        "lora_B": 0.5 * jax.random.normal(keys[7], (out2, r2), dtype=jnp.float32),
        "lora_alpha": 2.0,
    }
    out2_ = jax.block_until_ready(lora_linear(x2, params2, lora_enabled=True))
    ref2 = lora_linear_ref(x2, params2, lora_enabled=True)
    assert out2_.shape == (b2, s2, out2)
    assert jnp.allclose(out2_, ref2, rtol=2e-2, atol=2e-2), "config-2 mismatch"

    print("KERNEL_OK")
</pallas_src>

<mosaic_0001>
module attributes {stable_mosaic.version = 11 : i64} {
  func.func @kernel(%arg0: i32, %arg1: i32, %arg2: i32, %arg3: memref<256x512xbf16, #tpu.memory_space<vmem>>, %arg4: memref<256x512xbf16, #tpu.memory_space<vmem>>, %arg5: memref<256x256xf32, #tpu.memory_space<vmem>>, %arg6: memref<256x256xf32, #tpu.memory_space<vmem>>) attributes {dimension_semantics = [#tpu.dimension_semantics<parallel>, #tpu.dimension_semantics<parallel>, #tpu.dimension_semantics<arbitrary>], iteration_bounds = array<i64: 2, 2, 2>, scalar_prefetch = 0 : i64, scratch_operands = 1 : i64, tpu.core_type = #tpu.core_type<tc>, window_params = [{transform_indices = @transform_0, window_bounds = array<i64: 256, 512>}, {transform_indices = @transform_1, window_bounds = array<i64: 256, 512>}, {transform_indices = @transform_2, window_bounds = array<i64: 256, 256>}]} {
    %c0_i32 = arith.constant 0 : i32
    %0 = arith.cmpi eq, %arg2, %c0_i32 : i32
    %1 = arith.extui %0 : i1 to i32
    %c0_i32_0 = arith.constant 0 : i32
    %2 = arith.cmpi ne, %1, %c0_i32_0 : i32
    scf.if %2 {
      %cst_9 = arith.constant 0.000000e+00 : f32
      %12 = vector.broadcast %cst_9 : f32 to vector<256x256xf32>
      %c0_10 = arith.constant 0 : index
      %c0_11 = arith.constant 0 : index
      %13 = vector.load %arg6[%c0_10, %c0_11] : memref<256x256xf32, #tpu.memory_space<vmem>>, vector<256x256xf32>
      tpu.vector_store %arg6[%c0_10, %c0_11], %12 {strides = array<i32>} : memref<256x256xf32, #tpu.memory_space<vmem>>, vector<256x256xf32>,
    } else {
    }
    %c0 = arith.constant 0 : index
    %c0_1 = arith.constant 0 : index
    %3 = vector.load %arg6[%c0, %c0_1] : memref<256x256xf32, #tpu.memory_space<vmem>>, vector<256x256xf32>
    %c0_2 = arith.constant 0 : index
    %c0_3 = arith.constant 0 : index
    %4 = vector.load %arg3[%c0_2, %c0_3] : memref<256x512xbf16, #tpu.memory_space<vmem>>, vector<256x512xbf16>
    %c0_4 = arith.constant 0 : index
    %c0_5 = arith.constant 0 : index
    %5 = vector.load %arg4[%c0_4, %c0_5] : memref<256x512xbf16, #tpu.memory_space<vmem>>, vector<256x512xbf16>
    %cst = arith.constant dense<0.000000e+00> : vector<256x256xf32>
    %6 = tpu.matmul %4, %5, %cst {dimension_numbers = #tpu.dot_dimension_numbers<[1], [1], [0], [0], [0, 0, 1, 0], [], []>} : vector<256x512xbf16>, vector<256x512xbf16>, vector<256x256xf32> -> vector<256x256xf32>
    %7 = arith.addf %3, %6 : vector<256x256xf32>
    %c0_6 = arith.constant 0 : index
    %c0_7 = arith.constant 0 : index
    %8 = vector.load %arg6[%c0_6, %c0_7] : memref<256x256xf32, #tpu.memory_space<vmem>>, vector<256x256xf32>
    tpu.vector_store %arg6[%c0_6, %c0_7], %7 {strides = array<i32>} : memref<256x256xf32, #tpu.memory_space<vmem>>, vector<256x256xf32>,
    %c1_i32 = arith.constant 1 : i32
    %9 = arith.cmpi eq, %arg2, %c1_i32 : i32
    %10 = arith.extui %9 : i1 to i32
    %c0_i32_8 = arith.constant 0 : i32
    %11 = arith.cmpi ne, %10, %c0_i32_8 : i32
    scf.if %11 {
      %c0_9 = arith.constant 0 : index
      %c0_10 = arith.constant 0 : index
      %12 = vector.load %arg6[%c0_9, %c0_10] : memref<256x256xf32, #tpu.memory_space<vmem>>, vector<256x256xf32>
      %c0_11 = arith.constant 0 : index
      %c0_12 = arith.constant 0 : index
      %13 = vector.load %arg5[%c0_11, %c0_12] : memref<256x256xf32, #tpu.memory_space<vmem>>, vector<256x256xf32>
      tpu.vector_store %arg5[%c0_11, %c0_12], %12 {strides = array<i32>} : memref<256x256xf32, #tpu.memory_space<vmem>>, vector<256x256xf32>,
    } else {
    }
    return
  }
  func.func @transform_0(%arg0: i32, %arg1: i32, %arg2: i32) -> (i32, i32) {
    %c0_i32 = arith.constant 0 : i32
    return %arg0, %arg2 : i32, i32
  }
  func.func @transform_1(%arg0: i32, %arg1: i32, %arg2: i32) -> (i32, i32) {
    %c0_i32 = arith.constant 0 : i32
    return %arg1, %arg2 : i32, i32
  }
  func.func @transform_2(%arg0: i32, %arg1: i32, %arg2: i32) -> (i32, i32) {
    %c0_i32 = arith.constant 0 : i32
    return %arg0, %arg1 : i32, i32
  }
}

</mosaic_0001>

<bundles_post_ra>
// kernel: tpu_custom_call.1
= control target key start
LH: loop header
LB: loop body
LE: loop exit
PB: predicated region body
PF: predicated region fallthrough
CT: control target
= control target key end

     0   :  { %s3280_s0 = inlined_call_operand.hbm [shape: bf16[512,1024], index: 0, kind: input, shape index: {}]   ;;  %s3281_s1 = inlined_call_operand.hbm [shape: bf16[512,1024], index: 1, kind: input, shape index: {}]   ;;  %s3282_s2 = inlined_call_operand.hbm [shape: f32[512,512], index: 2, kind: output, shape index: {}]  }
   0x1   :  { %3299 = sst [smem:[#allocation22_spill]] %s3280_s0 }
   0x2   :  { %3300 = sst [smem:[#allocation23_spill]] %s3281_s1 }
   0x3   :  { %3301 = sst [smem:[#allocation24_spill]] %s3282_s2 }
   0x4   :  { %7 = vsyncpa [#allocation4], 0 }
   0x5   :  { %9 = vsyncpa [#allocation4 + $0x1], 0 }
   0x6   :  { %10 = vsyncpa [#allocation7], 0 }
   0x7   :  { %12 = vsyncpa [#allocation7 + $0x1], 0 }
   0x8   :  { %13 = vsyncpa [#allocation5], 0 }
   0x9   :  { %15 = vsyncpa [#allocation5 + $0x1], 0  ;;  %s2675_s9 = smov 0   ;;  %s2677_s10 = smov 0  }
   0xa   :  { %s2679_s11 = smov 0   ;;  %s2681_s12 = smov 0  }
   0xb   :  { %s2683_s13 = smov 0   ;;  %s2685_s14 = smov 0  }
   0xc   :  { %s2687_s15 = smov 0   ;;  %s2689_s16 = smov 0  }
   0xd   :  { %s2691_s17 = smov 0   ;;  %s2693_s18 = smov 0  }
   0xe   :  { %s2695_s19 = smov 0   ;;  %s2697_s20 = smov 0  }
   0xf   :  { %s2699_s21 = smov 0   ;;  %s2701_s22 = smov 0  }
  0x10   :  { %s2703_s23 = smov 0   ;;  %s2705_s24 = smov 0  }
  0x11 LB: > { %3302 = sst [smem:[#allocation12_spill]] %s2616_s16  ;;  %s1924_s25 = sadd.s32 4294967295, %s2648_s24   ;;  %s2648_s24 = sphi %s2705_s24, %s21_s24   ;;  %s2644_s23 = sphi %s2703_s23, %s3350_s23   ;;  %s2640_s22 = sphi %s2701_s22, %s3349_s22   ;;  %s2636_s21 = sphi %s2699_s21, %s3362_s21   ;;  %s2632_s20 = sphi %s2697_s20, %s3361_s20   ;;  %s2628_s19 = sphi %s2695_s19, %s3346_s19   ;;  %s2624_s18 = sphi %s2693_s18, %s3360_s18   ;;  %s2620_s17 = sphi %s2691_s17, %s3359_s17   ;;  %s2616_s16 = sphi %s2689_s16, %s3358_s16   ;;  %s2612_s15 = sphi %s2687_s15, %s3357_s15   ;;  %s2608_s14 = sphi %s2685_s14, %s3356_s14   ;;  %s2604_s13 = sphi %s2683_s13, %s3355_s13   ;;  %s2600_s12 = sphi %s2681_s12, %s3354_s12   ;;  %s2596_s11 = sphi %s2679_s11, %s3353_s11   ;;  %s2592_s10 = sphi %s2677_s10, %s3352_s10   ;;  %s2588_s9 = sphi %s2675_s9, %s3351_s9  }
  0x12   : > { %3303 = sst [smem:[#allocation13_spill]] %s2624_s18  ;;  %s33_s26 = sadd.s32 1, %s2636_s21 }
  0x13   : > { %3304 = sst [smem:[#allocation14_spill]] %s2628_s19  ;;  %p2755_p0 = scmp.ge.s32.totalorder %s33_s26, 2 }
  0x14   : > { %3305 = sst [smem:[#allocation15_spill]] %s2632_s20  ;;  %p56_p1 = scmp.ne.s32.totalorder %s2620_s17, %s2616_s16 }
  0x15   : > { %3306 = sst [smem:[#allocation16_spill]] %s2640_s22  ;;  %s3364_s26 = smov (%p2755_p0, %s33_s26), 0 }
  0x16   : > { %3307 = sst [smem:[#allocation17_spill]] %s2644_s23  ;;  %p3289_p2 = scmp.eq.s32.totalorder %s2648_s24, 0 }
  0x17   : > { %3309 = sst [smem:[#allocation18_spill]] %s3364_s26  ;;  %p62_p3 = scmp.ne.s32.totalorder %s2616_s16, %s2612_s15 }
  0x18   : > { %s2771_s30 = ssub.s32 %s2636_s21, %s3364_s26  ;;  %p2773_p4 = scmp.eq.s32.totalorder %s1924_s25, 0 }
  0x19   : > { %p2779_p5 = por %p3289_p2, %p56_p1  ;;  %p2783_p6 = scmp.eq.s32.totalorder %s1924_s25, 7 }
  0x1a   : > { %p2789_p7 = por %p2773_p4, %p62_p3  ;;  %p3288_p8 = scmp.lt.s32.totalorder %s2648_s24, 8 }
  0x1b   : > { %s142_s7 = sand.u32 1, %s2620_s17   ;;  %s3293_s15 = sshll.u32 %s2636_s21, 2 }
  0x1c   : > { %s3313_s6 = scalar_select %p2789_p7, 1, 0 }
  0x1d   : > { %s1928_s8 = sshll.u32 %s142_s7, 9  ;;  %s2079_s29 = sshll.u32 %s2644_s23, 8 }
  0x1e   : > { %3314 = sst [smem:[#allocation19_spill]] %s3313_s6  ;;  %s146_s28 = scalar_lea.vmem [#allocation3], %s1928_s8 }
  0x1f   : > { %s156_s26 = sshll.u32 %s146_s28, 4  ;;  %s153_s2 = sadd.s32 %s2079_s29, %s3293_s15  ;;  %s157_s26 = int_to_ptr.vmem [resolvable:$true] %s156_s26 }
  0x20   : > { %s1932_s20 = sshll.u32 %s153_s2, 6  ;;  %p2803_p9 = pnand %p3288_p8, %p2779_p5 }
  0x21   : > { %s3316_s0 = sld [smem:[#allocation22_spill]]  ;;  %p1938_p10 = scmp.ge.s32.totalorder %s2648_s24, 1 }
  0x22   : > { %s143_s16 = scalar_lea.sflag [#allocation4], %s142_s7  ;;  %p2430_p11 = pneg %p2803_p9 }
  0x23   : > { %s2441_s28 = scalar_lea.vmem %s157_s26, 8192  ;;  %s2650_s2 = smov [#allocation3]  }
  0x24   : > { %p2442_p12 = scmp.ne.s32.totalorder %s157_s26, %s2441_s28  ;;  %s2446_s29 = sshll.u32 %s2650_s2, 4  ;;  %s2447_s29 = int_to_ptr.vmem [resolvable:$false] %s2446_s29 }
  0x25   : > { %s2448_s4 = scalar_lea.vmem %s2447_s29, 16384  ;;  %p2449_p3 = scmp.lt.s32.totalorder %s157_s26, %s2447_s29 }
  0x26   : > { %p2444_p13 = pnand %p2442_p12, %p2430_p11  ;;  %p2450_p5 = scmp.lt.s32.totalorder %s2448_s4, %s2441_s28 }
  0x27   : > { %s155_s6 = scalar_lea.hbm %s3316_s0, %s1932_s20 }
  0x28   : > { %p2445_p1 = pneg %p2444_p13  ;;  %p2451_p8 = por %p2450_p5, %p2449_p3 }
  0x2a   : > { %p2452_p2 = pnand %p2451_p8, %p2445_p1 }
  0x2c   : > { %2455 = shalt.err (!%p2452_p2)
}
  0x2d   : > { %s3290_s18 = smov 512   ;;  %s3291_s19 = smov 256  }
  0x2e   : > { %s3292_s20 = smov 16   ;;  %p188_p2 = scmp.lt.s32.totalorder %s2648_s24, 9 }
  0x2f   : > { %2091 = dma.hbm_to_vmem [thread:$0]  (!%p2803_p9), %s155_s6, 8192, %s157_s26, %s143_s16, %s3290_s18, %s3291_s19, %s3292_s20  }
  0x30   : > { %p2821_p8 = pnand %p1938_p10, %p188_p2  ;;  %s1925_s8 = sadd.s32 4294967294, %s2648_s24  }
  0x31   : > { %s36_s28 = sadd.s32 1, %s2640_s22  ;;  %s77_s25 = sadd.s32 1, %s2608_s14 }
  0x32   : > { %s3366_s28 = smov (!%p2755_p0, %s36_s28), %s2640_s22  ;;  %p84_p11 = scmp.ne.s32.totalorder %s2608_s14, %s2604_s13 }
  0x33   : > { %p38_p12 = scmp.ge.s32.totalorder %s3366_s28, 2  ;;  %p90_p9 = scmp.ne.s32.totalorder %s2604_s13, %s2600_s12 }
  0x34   : > { %p3318_p13 = scmp.eq.s32.totalorder %s2648_s24, 0  ;;  %s105_s26 = sadd.s32 1, %s2596_s11 }
  0x35   : > { %s3368_s28 = smov (%p38_p12, %s3366_s28), 0  ;;  %s3321_s6 = sadd.s32 1, %s2644_s23 }
  0x36   : > { %p2837_p1 = por %p84_p11, %p3318_p13  ;;  %3320 = sst [smem:[#allocation20_spill]] %s3368_s28 }
  0x37   : > { %s3370_s6 = smov (!%p38_p12, %s3321_s6), %s2644_s23  ;;  %s72_s27 = ssub.s32 %s2640_s22, %s3368_s28 }
  0x38   : > { %p2851_p0 = por %p90_p9, %p2773_p4  ;;  %p42_p10 = scmp.ge.s32.totalorder %s3370_s6, 2 }
  0x39   : > { %s74_s12 = sor.u32 %s72_s27, %s2771_s30  ;;  %p115_p5 = scmp.ne.s32.totalorder %s2596_s11, %s2592_s10 }
  0x3a   : > { %p75_p3 = scmp.eq.s32.totalorder %s74_s12, 0  ;;  %s3372_s6 = smov (%p42_p10, %s3370_s6), 0 }
  0x3b   : > { %3323 = sst [smem:[#allocation21_spill]] %s3372_s6  ;;  %s44_s3 = ssub.s32 %s2644_s23, %s3372_s6 }
  0x3c   : > { %s2861_s29 = scalar_select %p75_p3, %s2608_s14, %s77_s25  }
  0x3d   : > { %p2867_p2 = por %p2783_p6, %p115_p5  ;;  %s46_s18 = sor.u32 %s2771_s30, %s44_s3 }
  0x3e   : > { %s102_s19 = sor.u32 %s72_s27, %s44_s3  ;;  %p47_p4 = scmp.eq.s32.totalorder %s46_s18, 0 }
  0x3f   : > { %s3324_s4 = scalar_select %p2867_p2, 1, 0 }
  0x40   : > { %p103_p11 = scmp.eq.s32.totalorder %s102_s19, 0  ;;  %p121_p12 = scmp.ne.s32.totalorder %s2592_s10, %s2588_s9 }
  0x41   : > { %p122_p9 = scmp.eq.s32.totalorder %s1925_s8, 7  ;;  %s3325_s12 = sadd.s32 1, %s2620_s17 }
  0x42   : > { %s2877_s20 = scalar_select %p47_p4, %s2620_s17, %s3325_s12  }
  0x43   : > { %s2880_s15 = scalar_select %p103_p11, %s2596_s11, %s105_s26  }
  0x44   : > { %p2882_p13 = por %p122_p9, %p121_p12  ;;  %s166_s5 = sand.u32 1, %s2608_s14  }
  0x45   : > { %s1933_s0 = sshll.u32 %s166_s5, 9  ;;  %s2080_s6 = sshll.u32 %s2640_s22, 8 }
  0x46   : > { %s3326_s25 = scalar_select %p2882_p13, 1, 0 }
  0x47   : > { %s3327_s30 = sshll.u32 %s2636_s21, 2  ;;  %s170_s18 = scalar_lea.vmem [#allocation6], %s1933_s0 }
  0x48   : > { %s177_s27 = sadd.s32 %s2080_s6, %s3327_s30  ;;  %s180_s3 = sshll.u32 %s170_s18, 4  ;;  %s181_s3 = int_to_ptr.vmem [resolvable:$true] %s180_s3 }
  0x49   : > { %s1937_s28 = sshll.u32 %s177_s27, 6  ;;  %s3328_s1 = sld [smem:[#allocation23_spill]] }
  0x4a   : > { %p3329_p6 = scmp.lt.s32.totalorder %s2648_s24, 8  ;;  %s167_s23 = scalar_lea.sflag [#allocation7], %s166_s5 }
  0x4b   : > { %s2469_s22 = scalar_lea.vmem %s181_s3, 8192  ;;  %s2654_s0 = smov [#allocation6]  }
  0x4c   : > { %p2897_p10 = pnand %p3329_p6, %p2837_p1  ;;  %p2470_p5 = scmp.ne.s32.totalorder %s181_s3, %s2469_s22 }
  0x4d   : > { %s2474_s6 = sshll.u32 %s2654_s0, 4  ;;  %s2475_s6 = int_to_ptr.vmem [resolvable:$false] %s2474_s6 }
  0x4e   : > { %p2458_p3 = pneg %p2897_p10  ;;  %s2476_s30 = scalar_lea.vmem %s2475_s6, 16384 }
  0x4f   : > { %s179_s12 = scalar_lea.hbm %s3328_s1, %s1937_s28  ;;  %p2477_p12 = scmp.lt.s32.totalorder %s181_s3, %s2475_s6 }
  0x50   : > { %p2472_p4 = pnand %p2470_p5, %p2458_p3  ;;  %p2478_p9 = scmp.lt.s32.totalorder %s2476_s30, %s2469_s22 }
  0x52   : > { %p2473_p11 = pneg %p2472_p4  ;;  %p2479_p13 = por %p2478_p9, %p2477_p12 }
  0x54   : > { %p2480_p2 = pnand %p2479_p13, %p2473_p11 }
  0x56   : > { %2483 = shalt.err (!%p2480_p2)
}
  0x57   : > { %s3331_s28 = smov 16   ;;  %s3332_s16 = smov 256  }
  0x58   : > { %s3333_s5 = smov 512   ;;  %192 = sbr.rel (%p2821_p8) target bundleno = 666 (0x29a), region = 28 }
  0x59   : > { %2094 = dma.hbm_to_vmem [thread:$0]  (!%p2897_p10), %s179_s12, 8192, %s181_s3, %s167_s23, %s3333_s5, %s3332_s16, %s3331_s28  }
  0x5a   : > { %s3334_s27 = sld [smem:[#allocation12_spill]] (!%p2821_p8) }
  0x60   : > { %s194_s19 = sand.u32 1, %s3334_s27  }
  0x61   : > { %s1939_s8 = sshll.u32 %s194_s19, 9  ;;  %s195_s0 = scalar_lea.sflag [#allocation4], %s194_s19 }
  0x62   : > { %s2911_s1 = scalar_lea.vmem [#allocation3], %s1939_s8 }
  0x63   : > { %2575 = dma.done.wait (%p2789_p7), %s195_s0, 8192  }
  0x64   : > { %2577 = vsyncadd (%p2789_p7), %s195_s0, 4294959104  ;;  %s203_s22 = sand.u32 1, %s2604_s13  }
  0x65   : > { %s1940_s26 = sshll.u32 %s203_s22, 9  ;;  %s204_s23 = scalar_lea.sflag [#allocation7], %s203_s22 }
  0x66   : > { %s2918_s3 = scalar_lea.vmem [#allocation6], %s1940_s26 }
  0x67   : > { %2579 = dma.done.wait (%p2851_p0), %s204_s23, 8192  }
  0x68   : > { %2581 = vsyncadd (%p2851_p0), %s204_s23, 4294959104  ;;  %s230_s7 = sand.u32 1, %s2592_s10   ;;  %s3336_s30 = sld [smem:[#allocation13_spill]] }
  0x69   : > { %s1941_s12 = sshll.u32 %s230_s7, 9 }
  0x6a   : > { %s2927_s6 = scalar_lea.vmem [#allocation8], %s1941_s12 }
  0x6e   : > { %p1942_p7 = scmp.ne.s32.totalorder %s3336_s30, 0 }
  0x70   : > { %242 = sbr.rel (%p1942_p7) target bundleno = 150 (0x96), region = 40 }
  0x75   : > { %v2655_v0 = vmov 0.0  }
  0x76   : > { %243 = vst [vmem:[#allocation2 + $0xb0] sm:$0xff] %v2655_v0  ;;  %244 = vst [vmem:[#allocation2 + $0x1b0] sm:$0xff] %v2655_v0 }
  0x77   : > { %245 = vst [vmem:[#allocation2 + $0xd8] sm:$0xff] %v2655_v0  ;;  %246 = vst [vmem:[#allocation2 + $0x18] sm:$0xff] %v2655_v0 }
  0x78   : > { %247 = vst [vmem:[#allocation2 + $0x50] sm:$0xff] %v2655_v0  ;;  %248 = vst [vmem:[#allocation2 + $0x168] sm:$0xff] %v2655_v0 }
  0x79   : > { %249 = vst [vmem:[#allocation2 + $0x130] sm:$0xff] %v2655_v0  ;;  %250 = vst [vmem:[#allocation2 + $0x48] sm:$0xff] %v2655_v0 }
  0x7a   : > { %251 = vst [vmem:[#allocation2 + $0x180] sm:$0xff] %v2655_v0  ;;  %252 = vst [vmem:[#allocation2 + $0x110] sm:$0xff] %v2655_v0 }
  0x7b   : > { %253 = vst [vmem:[#allocation2 + $0x118] sm:$0xff] %v2655_v0  ;;  %254 = vst [vmem:[#allocation2 + $0x98] sm:$0xff] %v2655_v0 }
  0x7c   : > { %255 = vst [vmem:[#allocation2 + $0x120] sm:$0xff] %v2655_v0  ;;  %256 = vst [vmem:[#allocation2 + $0x150] sm:$0xff] %v2655_v0 }
  0x7d   : > { %257 = vst [vmem:[#allocation2 + $0x108] sm:$0xff] %v2655_v0  ;;  %258 = vst [vmem:[#allocation2 + $0x60] sm:$0xff] %v2655_v0 }
  0x7e   : > { %259 = vst [vmem:[#allocation2 + $0xe0] sm:$0xff] %v2655_v0  ;;  %260 = vst [vmem:[#allocation2 + $0x188] sm:$0xff] %v2655_v0 }
  0x7f   : > { %261 = vst [vmem:[#allocation2 + $0x138] sm:$0xff] %v2655_v0  ;;  %262 = vst [vmem:[#allocation2 + $0x140] sm:$0xff] %v2655_v0 }
  0x80   : > { %263 = vst [vmem:[#allocation2 + $0x80] sm:$0xff] %v2655_v0  ;;  %264 = vst [vmem:[#allocation2 + $0x1a8] sm:$0xff] %v2655_v0 }
  0x81   : > { %265 = vst [vmem:[#allocation2 + $0x1b8] sm:$0xff] %v2655_v0  ;;  %266 = vst [vmem:[#allocation2 + $0x28] sm:$0xff] %v2655_v0 }
  0x82   : > { %267 = vst [vmem:[#allocation2 + $0x1e8] sm:$0xff] %v2655_v0  ;;  %268 = vst [vmem:[#allocation2 + $0xf8] sm:$0xff] %v2655_v0 }
  0x83   : > { %269 = vst [vmem:[#allocation2 + $0x160] sm:$0xff] %v2655_v0  ;;  %270 = vst [vmem:[#allocation2 + $0x30] sm:$0xff] %v2655_v0 }
  0x84   : > { %271 = vst [vmem:[#allocation2 + $0x1e0] sm:$0xff] %v2655_v0  ;;  %272 = vst [vmem:[#allocation2] sm:$0xff] %v2655_v0 }
  0x85   : > { %273 = vst [vmem:[#allocation2 + $0xf0] sm:$0xff] %v2655_v0  ;;  %274 = vst [vmem:[#allocation2 + $0x8] sm:$0xff] %v2655_v0 }
  0x86   : > { %275 = vst [vmem:[#allocation2 + $0x148] sm:$0xff] %v2655_v0  ;;  %276 = vst [vmem:[#allocation2 + $0x1d0] sm:$0xff] %v2655_v0 }
  0x87   : > { %277 = vst [vmem:[#allocation2 + $0x100] sm:$0xff] %v2655_v0  ;;  %278 = vst [vmem:[#allocation2 + $0xc8] sm:$0xff] %v2655_v0 }
  0x88   : > { %279 = vst [vmem:[#allocation2 + $0x40] sm:$0xff] %v2655_v0  ;;  %280 = vst [vmem:[#allocation2 + $0x1f8] sm:$0xff] %v2655_v0 }
  0x89   : > { %281 = vst [vmem:[#allocation2 + $0x20] sm:$0xff] %v2655_v0  ;;  %282 = vst [vmem:[#allocation2 + $0x128] sm:$0xff] %v2655_v0 }
  0x8a   : > { %283 = vst [vmem:[#allocation2 + $0x1a0] sm:$0xff] %v2655_v0  ;;  %284 = vst [vmem:[#allocation2 + $0x1f0] sm:$0xff] %v2655_v0 }
  0x8b   : > { %285 = vst [vmem:[#allocation2 + $0xe8] sm:$0xff] %v2655_v0  ;;  %286 = vst [vmem:[#allocation2 + $0x78] sm:$0xff] %v2655_v0 }
  0x8c   : > { %287 = vst [vmem:[#allocation2 + $0x70] sm:$0xff] %v2655_v0  ;;  %288 = vst [vmem:[#allocation2 + $0x90] sm:$0xff] %v2655_v0 }
  0x8d   : > { %289 = vst [vmem:[#allocation2 + $0x1d8] sm:$0xff] %v2655_v0  ;;  %290 = vst [vmem:[#allocation2 + $0xd0] sm:$0xff] %v2655_v0 }
  0x8e   : > { %291 = vst [vmem:[#allocation2 + $0xb8] sm:$0xff] %v2655_v0  ;;  %292 = vst [vmem:[#allocation2 + $0x88] sm:$0xff] %v2655_v0 }
  0x8f   : > { %293 = vst [vmem:[#allocation2 + $0xa8] sm:$0xff] %v2655_v0  ;;  %294 = vst [vmem:[#allocation2 + $0x1c8] sm:$0xff] %v2655_v0 }
  0x90   : > { %295 = vst [vmem:[#allocation2 + $0x170] sm:$0xff] %v2655_v0  ;;  %296 = vst [vmem:[#allocation2 + $0x178] sm:$0xff] %v2655_v0 }
  0x91   : > { %297 = vst [vmem:[#allocation2 + $0x68] sm:$0xff] %v2655_v0  ;;  %298 = vst [vmem:[#allocation2 + $0x190] sm:$0xff] %v2655_v0 }
  0x92   : > { %299 = vst [vmem:[#allocation2 + $0x198] sm:$0xff] %v2655_v0  ;;  %300 = vst [vmem:[#allocation2 + $0x38] sm:$0xff] %v2655_v0 }
  0x93   : > { %301 = vst [vmem:[#allocation2 + $0xc0] sm:$0xff] %v2655_v0  ;;  %302 = vst [vmem:[#allocation2 + $0x1c0] sm:$0xff] %v2655_v0 }
  0x94   : > { %303 = vst [vmem:[#allocation2 + $0x158] sm:$0xff] %v2655_v0  ;;  %304 = vst [vmem:[#allocation2 + $0x10] sm:$0xff] %v2655_v0 }
  0x95   : > { %305 = vst [vmem:[#allocation2 + $0x58] sm:$0xff] %v2655_v0  ;;  %306 = vst [vmem:[#allocation2 + $0xa0] sm:$0xff] %v2655_v0 }
  0x96 PF: > { %v2236_v1 = vld [vmem:[%s2918_s3 + $0xe4] ss:$16 sps:$4 sm:$0xff]   ;;  %v2238_v2 = vld [vmem:[%s2918_s3 + $0xec] ss:$16 sps:$4 sm:$0xff]   ;;  %v2240_v3 = vld [vmem:[%s2918_s3 + $0xe0] ss:$16 sps:$4 sm:$0xff]  }
  0x97   : > { %1139 = vmatprep.subr.bf16.mxu0 %v2236_v1  ;;  %v2241_v4 = vld [vmem:[%s2918_s3 + $0xe8] ss:$16 sps:$4 sm:$0xff]   ;;  %1332 = vmatprep.subr.bf16.mxu1 %v2238_v2  ;;  %v2242_v5 = vld [vmem:[%s2918_s3 + $0xc4] ss:$16 sps:$4 sm:$0xff]   ;;  %v2244_v6 = vld [vmem:[%s2918_s3 + $0xcc] ss:$16 sps:$4 sm:$0xff]  }
  0x98   : > { %1140 = vmatpush1.bf16.xpose.msra.mxu0 %v2240_v3  ;;  %1333 = vmatpush1.bf16.xpose.msra.mxu1 %v2241_v4  ;;  %v2246_v7 = vld [vmem:[%s2918_s3 + $0xc0] ss:$16 sps:$4 sm:$0xff]   ;;  %v2247_v8 = vld [vmem:[%s2918_s3 + $0xc8] ss:$16 sps:$4 sm:$0xff]   ;;  %v2248_v9 = vld [vmem:[%s2918_s3 + $0xa4] ss:$16 sps:$4 sm:$0xff]  }
  0x99   : > { %1141 = vmatprep.subr.bf16.mxu0 %v2242_v5  ;;  %1334 = vmatprep.subr.bf16.mxu1 %v2244_v6  ;;  %v2250_v10 = vld [vmem:[%s2918_s3 + $0xac] ss:$16 sps:$4 sm:$0xff]   ;;  %v2252_v11 = vld [vmem:[%s2918_s3 + $0xa0] ss:$16 sps:$4 sm:$0xff]   ;;  %v2253_v12 = vld [vmem:[%s2918_s3 + $0xa8] ss:$16 sps:$4 sm:$0xff]  }
  0x9a   : > { %v2254_v13 = vld [vmem:[%s2918_s3 + $0x84] ss:$16 sps:$4 sm:$0xff]   ;;  %v2256_v14 = vld [vmem:[%s2918_s3 + $0x8c] ss:$16 sps:$4 sm:$0xff]   ;;  %v2258_v15 = vld [vmem:[%s2918_s3 + $0x80] ss:$16 sps:$4 sm:$0xff]  }
  0x9b   : > { %v2259_v16 = vld [vmem:[%s2918_s3 + $0x88] ss:$16 sps:$4 sm:$0xff]   ;;  %v2260_v17 = vld [vmem:[%s2918_s3 + $0x64] ss:$16 sps:$4 sm:$0xff]   ;;  %v2262_v18 = vld [vmem:[%s2918_s3 + $0x6c] ss:$16 sps:$4 sm:$0xff]  }
  0x9c   : > { %v2264_v19 = vld [vmem:[%s2918_s3 + $0x60] ss:$16 sps:$4 sm:$0xff]   ;;  %v2265_v20 = vld [vmem:[%s2918_s3 + $0x68] ss:$16 sps:$4 sm:$0xff]   ;;  %v2266_v21 = vld [vmem:[%s2918_s3 + $0x44] ss:$16 sps:$4 sm:$0xff]  }
  0x9d   : > { %v2268_v22 = vld [vmem:[%s2918_s3 + $0x4c] ss:$16 sps:$4 sm:$0xff]   ;;  %v2270_v23 = vld [vmem:[%s2918_s3 + $0x40] ss:$16 sps:$4 sm:$0xff]   ;;  %v2271_v24 = vld [vmem:[%s2918_s3 + $0x48] ss:$16 sps:$4 sm:$0xff]  }
  0x9e   : > { %v2272_v25 = vld [vmem:[%s2918_s3 + $0x24] ss:$16 sps:$4 sm:$0xff]   ;;  %v2274_v26 = vld [vmem:[%s2918_s3 + $0x2c] ss:$16 sps:$4 sm:$0xff]   ;;  %v2276_v29 = vld [vmem:[%s2918_s3 + $0x20] ss:$16 sps:$4 sm:$0xff]  }
  0x9f   : > { %v2334_v27 = vld [vmem:[%s2911_s1 + $0x4] ss:$16 sps:$4 sm:$0xff]   ;;  %v2337_v28 = vld [vmem:[%s2911_s1 + $0xc] ss:$16 sps:$4 sm:$0xff]   ;;  %v2277_v30 = vld [vmem:[%s2918_s3 + $0x28] ss:$16 sps:$4 sm:$0xff]  }
  0xa0   : > { %1142 = vmatpush1.bf16.xpose.msra.mxu0 %v2246_v7  ;;  %1335 = vmatpush1.bf16.xpose.msra.mxu1 %v2247_v8  ;;  %v2278_v31 = vld [vmem:[%s2918_s3 + $0x4] ss:$16 sps:$4 sm:$0xff]   ;;  %v2280_v32 = vld [vmem:[%s2918_s3 + $0xc] ss:$16 sps:$4 sm:$0xff]   ;;  %v2282_v33 = vld [vmem:[%s2918_s3] ss:$16 sps:$4 sm:$0xff]  }
  0xa1   : > { %1143 = vmatprep.subr.bf16.mxu0 %v2248_v9  ;;  %1336 = vmatprep.subr.bf16.mxu1 %v2250_v10  ;;  %v2283_v34 = vld [vmem:[%s2918_s3 + $0x8] ss:$16 sps:$4 sm:$0xff]   ;;  %v2284_v35 = vld [vmem:[%s2918_s3 + $0x1e4] ss:$16 sps:$4 sm:$0xff]   ;;  %v2286_v36 = vld [vmem:[%s2918_s3 + $0x1ec] ss:$16 sps:$4 sm:$0xff]  }
  0xa2   : > { %1171 = vmatprep.mubr.bf16.mxu0 %v2334_v27  ;;  %1364 = vmatprep.mubr.bf16.mxu1 %v2337_v28  ;;  %v2288_v37 = vld [vmem:[%s2918_s3 + $0x1e0] ss:$16 sps:$4 sm:$0xff]   ;;  %v2289_v38 = vld [vmem:[%s2918_s3 + $0x1e8] ss:$16 sps:$4 sm:$0xff]   ;;  %v2290_v39 = vld [vmem:[%s2918_s3 + $0x1c4] ss:$16 sps:$4 sm:$0xff]  }
  0xa3   : > { %v2292_v40 = vld [vmem:[%s2918_s3 + $0x1cc] ss:$16 sps:$4 sm:$0xff]   ;;  %v2294_v41 = vld [vmem:[%s2918_s3 + $0x1c0] ss:$16 sps:$4 sm:$0xff]   ;;  %v2295_v42 = vld [vmem:[%s2918_s3 + $0x1c8] ss:$16 sps:$4 sm:$0xff]  }
  0xa4   : > { %v2296_v43 = vld [vmem:[%s2918_s3 + $0x1a4] ss:$16 sps:$4 sm:$0xff]   ;;  %v2298_v44 = vld [vmem:[%s2918_s3 + $0x1ac] ss:$16 sps:$4 sm:$0xff]   ;;  %v2300_v45 = vld [vmem:[%s2918_s3 + $0x1a0] ss:$16 sps:$4 sm:$0xff]  }
  0xa5   : > { %v2301_v46 = vld [vmem:[%s2918_s3 + $0x1a8] ss:$16 sps:$4 sm:$0xff]   ;;  %v2302_v47 = vld [vmem:[%s2918_s3 + $0x184] ss:$16 sps:$4 sm:$0xff]   ;;  %v2304_v48 = vld [vmem:[%s2918_s3 + $0x18c] ss:$16 sps:$4 sm:$0xff]  }
  0xa6   : > { %v2306_v49 = vld [vmem:[%s2918_s3 + $0x180] ss:$16 sps:$4 sm:$0xff]   ;;  %v2307_v50 = vld [vmem:[%s2918_s3 + $0x188] ss:$16 sps:$4 sm:$0xff]   ;;  %v2308_v51 = vld [vmem:[%s2918_s3 + $0x164] ss:$16 sps:$4 sm:$0xff]  }
  0xa7   : > { %v2310_v52 = vld [vmem:[%s2918_s3 + $0x16c] ss:$16 sps:$4 sm:$0xff]   ;;  %v2312_v53 = vld [vmem:[%s2918_s3 + $0x160] ss:$16 sps:$4 sm:$0xff]   ;;  %v2313_v54 = vld [vmem:[%s2918_s3 + $0x168] ss:$16 sps:$4 sm:$0xff]  }
  0xa8   : > { %1144 = vmatpush1.bf16.xpose.msra.mxu0 %v2252_v11  ;;  %1337 = vmatpush1.bf16.xpose.msra.mxu1 %v2253_v12  ;;  %v2314_v55 = vld [vmem:[%s2918_s3 + $0x144] ss:$16 sps:$4 sm:$0xff]   ;;  %v2316_v56 = vld [vmem:[%s2918_s3 + $0x14c] ss:$16 sps:$4 sm:$0xff]   ;;  %v2318_v57 = vld [vmem:[%s2918_s3 + $0x140] ss:$16 sps:$4 sm:$0xff]  }
  0xa9   : > { %1145 = vmatprep.subr.bf16.mxu0 %v2254_v13  ;;  %1338 = vmatprep.subr.bf16.mxu1 %v2256_v14  ;;  %v2319_v58 = vld [vmem:[%s2918_s3 + $0x148] ss:$16 sps:$4 sm:$0xff]   ;;  %v2320_v59 = vld [vmem:[%s2918_s3 + $0x124] ss:$16 sps:$4 sm:$0xff]   ;;  %v2322_v60 = vld [vmem:[%s2918_s3 + $0x12c] ss:$16 sps:$4 sm:$0xff]  }
  0xaa   : > { %v2324_v61 = vld [vmem:[%s2918_s3 + $0x120] ss:$16 sps:$4 sm:$0xff]   ;;  %v2325_v62 = vld [vmem:[%s2918_s3 + $0x128] ss:$16 sps:$4 sm:$0xff]   ;;  %v2326_v63 = vld [vmem:[%s2918_s3 + $0x104] ss:$16 sps:$4 sm:$0xff]  }
  0xab   : > { %v2328_v0 = vld [vmem:[%s2918_s3 + $0x10c] ss:$16 sps:$4 sm:$0xff]   ;;  %v2330_v1 = vld [vmem:[%s2918_s3 + $0x100] ss:$16 sps:$4 sm:$0xff]   ;;  %v2331_v2 = vld [vmem:[%s2918_s3 + $0x108] ss:$16 sps:$4 sm:$0xff]  }
  0xac   : > { %v2332_v3 = vld [vmem:[%s2911_s1] ss:$16 sps:$4 sm:$0xff]   ;;  %v2335_v4 = vld [vmem:[%s2911_s1 + $0x8] ss:$16 sps:$4 sm:$0xff]   ;;  %v2338_v5 = vld [vmem:[%s2911_s1 + $0x24] ss:$16 sps:$4 sm:$0xff]  }
  0xad   : > { %v2340_v6 = vld [vmem:[%s2911_s1 + $0x2c] ss:$16 sps:$4 sm:$0xff]   ;;  %v2342_v7 = vld [vmem:[%s2911_s1 + $0x20] ss:$16 sps:$4 sm:$0xff]   ;;  %v2343_v8 = vld [vmem:[%s2911_s1 + $0x28] ss:$16 sps:$4 sm:$0xff]  }
  0xae   : > { %v2344_v9 = vld [vmem:[%s2911_s1 + $0x44] ss:$16 sps:$4 sm:$0xff]   ;;  %v2346_v10 = vld [vmem:[%s2911_s1 + $0x4c] ss:$16 sps:$4 sm:$0xff]   ;;  %v2348_v11 = vld [vmem:[%s2911_s1 + $0x40] ss:$16 sps:$4 sm:$0xff]  }
  0xaf   : > { %v2349_v12 = vld [vmem:[%s2911_s1 + $0x48] ss:$16 sps:$4 sm:$0xff]   ;;  %v2350_v13 = vld [vmem:[%s2911_s1 + $0x64] ss:$16 sps:$4 sm:$0xff]   ;;  %v2352_v14 = vld [vmem:[%s2911_s1 + $0x6c] ss:$16 sps:$4 sm:$0xff]  }
  0xb0   : > { %1146 = vmatpush1.bf16.xpose.msra.mxu0 %v2258_v15  ;;  %1339 = vmatpush1.bf16.xpose.msra.mxu1 %v2259_v16  ;;  %v2354_v15 = vld [vmem:[%s2911_s1 + $0x60] ss:$16 sps:$4 sm:$0xff]   ;;  %v2355_v16 = vld [vmem:[%s2911_s1 + $0x68] ss:$16 sps:$4 sm:$0xff]  }
  0xb1   : > { %1147 = vmatprep.subr.bf16.mxu0 %v2260_v17  ;;  %1340 = vmatprep.subr.bf16.mxu1 %v2262_v18  ;;  %v2356_v17 = vld [vmem:[%s2911_s1 + $0x84] ss:$16 sps:$4 sm:$0xff]   ;;  %v2358_v18 = vld [vmem:[%s2911_s1 + $0x8c] ss:$16 sps:$4 sm:$0xff]   ;;  %v2372_v27 = vld [vmem:[%s2911_s1 + $0xc0] ss:$16 sps:$4 sm:$0xff]  }
  0xb2   : > { %v2373_v28 = vld [vmem:[%s2911_s1 + $0xc8] ss:$16 sps:$4 sm:$0xff]  }
  0xb8   : > { %1148 = vmatpush1.bf16.xpose.msra.mxu0 %v2264_v19  ;;  %1341 = vmatpush1.bf16.xpose.msra.mxu1 %v2265_v20  ;;  %v2360_v19 = vld [vmem:[%s2911_s1 + $0x80] ss:$16 sps:$4 sm:$0xff]   ;;  %v2361_v20 = vld [vmem:[%s2911_s1 + $0x88] ss:$16 sps:$4 sm:$0xff]  }
  0xb9   : > { %1149 = vmatprep.subr.bf16.mxu0 %v2266_v21  ;;  %1342 = vmatprep.subr.bf16.mxu1 %v2268_v22  ;;  %v2362_v21 = vld [vmem:[%s2911_s1 + $0xa4] ss:$16 sps:$4 sm:$0xff]   ;;  %v2364_v22 = vld [vmem:[%s2911_s1 + $0xac] ss:$16 sps:$4 sm:$0xff]  }
  0xc0   : > { %1150 = vmatpush1.bf16.xpose.msra.mxu0 %v2270_v23  ;;  %1343 = vmatpush1.bf16.xpose.msra.mxu1 %v2271_v24  ;;  %v2366_v23 = vld [vmem:[%s2911_s1 + $0xa0] ss:$16 sps:$4 sm:$0xff]   ;;  %v2367_v24 = vld [vmem:[%s2911_s1 + $0xa8] ss:$16 sps:$4 sm:$0xff]  }
  0xc1   : > { %1151 = vmatprep.subr.bf16.mxu0 %v2272_v25  ;;  %1344 = vmatprep.subr.bf16.mxu1 %v2274_v26  ;;  %v2368_v25 = vld [vmem:[%s2911_s1 + $0xc4] ss:$16 sps:$4 sm:$0xff]   ;;  %v2370_v26 = vld [vmem:[%s2911_s1 + $0xcc] ss:$16 sps:$4 sm:$0xff]  }
  0xc8   : > { %1152 = vmatpush1.bf16.xpose.msra.mxu0 %v2276_v29  ;;  %1345 = vmatpush1.bf16.xpose.msra.mxu1 %v2277_v30  ;;  %v2374_v29 = vld [vmem:[%s2911_s1 + $0xe4] ss:$16 sps:$4 sm:$0xff]   ;;  %v2376_v30 = vld [vmem:[%s2911_s1 + $0xec] ss:$16 sps:$4 sm:$0xff]  }
  0xc9   : > { %1153 = vmatprep.subr.bf16.mxu0 %v2278_v31  ;;  %1346 = vmatprep.subr.bf16.mxu1 %v2280_v32  ;;  %v2378_v31 = vld [vmem:[%s2911_s1 + $0xe0] ss:$16 sps:$4 sm:$0xff]   ;;  %v2379_v32 = vld [vmem:[%s2911_s1 + $0xe8] ss:$16 sps:$4 sm:$0xff]  }
  0xd0   : > { %1154 = vmatpush1.bf16.xpose.msra.mxu0 %v2282_v33  ;;  %1347 = vmatpush1.bf16.xpose.msra.mxu1 %v2283_v34  ;;  %v2380_v33 = vld [vmem:[%s2911_s1 + $0x104] ss:$16 sps:$4 sm:$0xff]   ;;  %v2382_v34 = vld [vmem:[%s2911_s1 + $0x10c] ss:$16 sps:$4 sm:$0xff]  }
  0xd1   : > { %1155 = vmatprep.subr.bf16.mxu0 %v2284_v35  ;;  %1348 = vmatprep.subr.bf16.mxu1 %v2286_v36  ;;  %v2384_v35 = vld [vmem:[%s2911_s1 + $0x100] ss:$16 sps:$4 sm:$0xff]   ;;  %v2385_v36 = vld [vmem:[%s2911_s1 + $0x108] ss:$16 sps:$4 sm:$0xff]  }
  0xd8   : > { %1156 = vmatpush2.bf16.xpose.msra.mxu0 %v2288_v37  ;;  %1349 = vmatpush2.bf16.xpose.msra.mxu1 %v2289_v38  ;;  %v2386_v37 = vld [vmem:[%s2911_s1 + $0x124] ss:$16 sps:$4 sm:$0xff]   ;;  %v2388_v38 = vld [vmem:[%s2911_s1 + $0x12c] ss:$16 sps:$4 sm:$0xff]  }
  0xd9   : > { %1157 = vmatprep.subr.bf16.mxu0 %v2290_v39  ;;  %1350 = vmatprep.subr.bf16.mxu1 %v2292_v40  ;;  %v2390_v39 = vld [vmem:[%s2911_s1 + $0x120] ss:$16 sps:$4 sm:$0xff]   ;;  %v2391_v40 = vld [vmem:[%s2911_s1 + $0x128] ss:$16 sps:$4 sm:$0xff]  }
  0xe0   : > { %1158 = vmatpush2.bf16.xpose.msra.mxu0 %v2294_v41  ;;  %1351 = vmatpush2.bf16.xpose.msra.mxu1 %v2295_v42  ;;  %v2392_v41 = vld [vmem:[%s2911_s1 + $0x144] ss:$16 sps:$4 sm:$0xff]   ;;  %v2394_v42 = vld [vmem:[%s2911_s1 + $0x14c] ss:$16 sps:$4 sm:$0xff]  }
  0xe1   : > { %1159 = vmatprep.subr.bf16.mxu0 %v2296_v43  ;;  %1352 = vmatprep.subr.bf16.mxu1 %v2298_v44  ;;  %v2396_v43 = vld [vmem:[%s2911_s1 + $0x140] ss:$16 sps:$4 sm:$0xff]   ;;  %v2397_v44 = vld [vmem:[%s2911_s1 + $0x148] ss:$16 sps:$4 sm:$0xff]  }
  0xe8   : > { %1160 = vmatpush2.bf16.xpose.msra.mxu0 %v2300_v45  ;;  %1353 = vmatpush2.bf16.xpose.msra.mxu1 %v2301_v46  ;;  %v2398_v45 = vld [vmem:[%s2911_s1 + $0x164] ss:$16 sps:$4 sm:$0xff]   ;;  %v2400_v46 = vld [vmem:[%s2911_s1 + $0x16c] ss:$16 sps:$4 sm:$0xff]  }
  0xe9   : > { %1161 = vmatprep.subr.bf16.mxu0 %v2302_v47  ;;  %1354 = vmatprep.subr.bf16.mxu1 %v2304_v48  ;;  %v2402_v47 = vld [vmem:[%s2911_s1 + $0x160] ss:$16 sps:$4 sm:$0xff]   ;;  %v2403_v48 = vld [vmem:[%s2911_s1 + $0x168] ss:$16 sps:$4 sm:$0xff]  }
  0xf0   : > { %1162 = vmatpush2.bf16.xpose.msra.mxu0 %v2306_v49  ;;  %1355 = vmatpush2.bf16.xpose.msra.mxu1 %v2307_v50  ;;  %v2404_v49 = vld [vmem:[%s2911_s1 + $0x184] ss:$16 sps:$4 sm:$0xff]   ;;  %v2406_v50 = vld [vmem:[%s2911_s1 + $0x18c] ss:$16 sps:$4 sm:$0xff]  }
  0xf1   : > { %1163 = vmatprep.subr.bf16.mxu0 %v2308_v51  ;;  %1356 = vmatprep.subr.bf16.mxu1 %v2310_v52  ;;  %v2408_v51 = vld [vmem:[%s2911_s1 + $0x180] ss:$16 sps:$4 sm:$0xff]   ;;  %v2409_v52 = vld [vmem:[%s2911_s1 + $0x188] ss:$16 sps:$4 sm:$0xff]  }
  0xf8   : > { %1164 = vmatpush2.bf16.xpose.msra.mxu0 %v2312_v53  ;;  %1357 = vmatpush2.bf16.xpose.msra.mxu1 %v2313_v54  ;;  %v2410_v53 = vld [vmem:[%s2911_s1 + $0x1a4] ss:$16 sps:$4 sm:$0xff]   ;;  %v2412_v54 = vld [vmem:[%s2911_s1 + $0x1ac] ss:$16 sps:$4 sm:$0xff]  }
  0xf9   : > { %1165 = vmatprep.subr.bf16.mxu0 %v2314_v55  ;;  %1358 = vmatprep.subr.bf16.mxu1 %v2316_v56  ;;  %v2414_v55 = vld [vmem:[%s2911_s1 + $0x1a0] ss:$16 sps:$4 sm:$0xff]   ;;  %v2415_v56 = vld [vmem:[%s2911_s1 + $0x1a8] ss:$16 sps:$4 sm:$0xff]  }
 0x100   : > { %1166 = vmatpush2.bf16.xpose.msra.mxu0 %v2318_v57  ;;  %1359 = vmatpush2.bf16.xpose.msra.mxu1 %v2319_v58  ;;  %v2416_v57 = vld [vmem:[%s2911_s1 + $0x1c4] ss:$16 sps:$4 sm:$0xff]   ;;  %v2418_v58 = vld [vmem:[%s2911_s1 + $0x1cc] ss:$16 sps:$4 sm:$0xff]  }
 0x101   : > { %1167 = vmatprep.subr.bf16.mxu0 %v2320_v59  ;;  %1360 = vmatprep.subr.bf16.mxu1 %v2322_v60  ;;  %v2420_v59 = vld [vmem:[%s2911_s1 + $0x1c0] ss:$16 sps:$4 sm:$0xff]   ;;  %v2421_v60 = vld [vmem:[%s2911_s1 + $0x1c8] ss:$16 sps:$4 sm:$0xff]  }
 0x108   : > { %1168 = vmatpush2.bf16.xpose.msra.mxu0 %v2324_v61  ;;  %1361 = vmatpush2.bf16.xpose.msra.mxu1 %v2325_v62  ;;  %v2422_v61 = vld [vmem:[%s2911_s1 + $0x1e4] ss:$16 sps:$4 sm:$0xff]   ;;  %v2424_v62 = vld [vmem:[%s2911_s1 + $0x1ec] ss:$16 sps:$4 sm:$0xff]  }
 0x109   : > { %1169 = vmatprep.subr.bf16.mxu0 %v2326_v63  ;;  %1362 = vmatprep.subr.bf16.mxu1 %v2328_v0  ;;  %v2426_v63 = vld [vmem:[%s2911_s1 + $0x1e0] ss:$16 sps:$4 sm:$0xff]   ;;  %v2427_v0 = vld [vmem:[%s2911_s1 + $0x1e8] ss:$16 sps:$4 sm:$0xff]   ;;  %s3337_s1 = sld [smem:[#allocation13_spill]] }
 0x10f   : > { %p2071_p8 = scmp.ne.s32.totalorder %s3337_s1, 1 }
 0x110   : > { %1170 = vmatpush2.bf16.xpose.msra.mxu0 %v2330_v1  ;;  %1363 = vmatpush2.bf16.xpose.msra.mxu1 %v2331_v2  ;;  %v307_v2 = vld [vmem:[#allocation2 + $0xb0] sm:$0xff] }
 0x117   : > { %1172 = vmatmul.mubr.bf16.vlgmr.msra.gmra.mxu0 %v2332_v3  ;;  %1365 = vmatmul.mubr.bf16.vlgmr.msra.gmra.mxu1 %v2335_v4 }
 0x118   : > { %1181 = vmatprep.mubr.bf16.mxu0 %v2338_v5  ;;  %1374 = vmatprep.mubr.bf16.mxu1 %v2340_v6  ;;  %v308_v6 = vld [vmem:[#allocation2 + $0x1b0] sm:$0xff] }
 0x11f   : > { %1182 = vmatmul.mubr.bf16.gmra.mxu0 %v2342_v7  ;;  %1375 = vmatmul.mubr.bf16.gmra.mxu1 %v2343_v8 }
 0x120   : > { %1191 = vmatprep.mubr.bf16.mxu0 %v2344_v9  ;;  %1384 = vmatprep.mubr.bf16.mxu1 %v2346_v10 }
 0x127   : > { %1192 = vmatmul.mubr.bf16.gmra.mxu0 %v2348_v11  ;;  %1385 = vmatmul.mubr.bf16.gmra.mxu1 %v2349_v12  ;;  %v309_v11 = vld [vmem:[#allocation2 + $0xd8] sm:$0xff] }
 0x128   : > { %1201 = vmatprep.mubr.bf16.mxu0 %v2350_v13  ;;  %1394 = vmatprep.mubr.bf16.mxu1 %v2352_v14 }
 0x12f   : > { %1202 = vmatmul.mubr.bf16.gmra.mxu0 %v2354_v15  ;;  %1395 = vmatmul.mubr.bf16.gmra.mxu1 %v2355_v16  ;;  %v310_v16 = vld [vmem:[#allocation2 + $0x18] sm:$0xff] }
 0x130   : > { %1211 = vmatprep.mubr.bf16.mxu0 %v2356_v17  ;;  %1404 = vmatprep.mubr.bf16.mxu1 %v2358_v18 }
 0x137   : > { %1212 = vmatmul.mubr.bf16.gmra.mxu0 %v2360_v19  ;;  %1405 = vmatmul.mubr.bf16.gmra.mxu1 %v2361_v20 }
 0x138   : > { %1221 = vmatprep.mubr.bf16.mxu0 %v2362_v21  ;;  %1414 = vmatprep.mubr.bf16.mxu1 %v2364_v22  ;;  %v311_v21 = vld [vmem:[#allocation2 + $0x50] sm:$0xff] }
 0x13f   : > { %1222 = vmatmul.mubr.bf16.gmra.mxu0 %v2366_v23  ;;  %1415 = vmatmul.mubr.bf16.gmra.mxu1 %v2367_v24 }
 0x140   : > { %1231 = vmatprep.mubr.bf16.mxu0 %v2368_v25  ;;  %1424 = vmatprep.mubr.bf16.mxu1 %v2370_v26  ;;  %v312_v26 = vld [vmem:[#allocation2 + $0x168] sm:$0xff] }
 0x147   : > { %1232 = vmatmul.mubr.bf16.gmra.mxu0 %v2372_v27  ;;  %1425 = vmatmul.mubr.bf16.gmra.mxu1 %v2373_v28 }
 0x148   : > { %1241 = vmatprep.mubr.bf16.mxu0 %v2374_v29  ;;  %1434 = vmatprep.mubr.bf16.mxu1 %v2376_v30 }
 0x14f   : > { %1242 = vmatmul.mubr.bf16.gmra.mxu0 %v2378_v31  ;;  %1435 = vmatmul.mubr.bf16.gmra.mxu1 %v2379_v32  ;;  %v313_v31 = vld [vmem:[#allocation2 + $0x130] sm:$0xff] }
 0x150   : > { %1251 = vmatprep.mubr.bf16.mxu0 %v2380_v33  ;;  %1444 = vmatprep.mubr.bf16.mxu1 %v2382_v34 }
 0x157   : > { %1252 = vmatmul.mubr.bf16.gmra.mxu0 %v2384_v35  ;;  %1445 = vmatmul.mubr.bf16.gmra.mxu1 %v2385_v36  ;;  %v314_v36 = vld [vmem:[#allocation2 + $0x48] sm:$0xff] }
 0x158   : > { %1261 = vmatprep.mubr.bf16.mxu0 %v2386_v37  ;;  %1454 = vmatprep.mubr.bf16.mxu1 %v2388_v38 }
 0x15f   : > { %1262 = vmatmul.mubr.bf16.gmra.mxu0 %v2390_v39  ;;  %1455 = vmatmul.mubr.bf16.gmra.mxu1 %v2391_v40 }
 0x160   : > { %1271 = vmatprep.mubr.bf16.mxu0 %v2392_v41  ;;  %1464 = vmatprep.mubr.bf16.mxu1 %v2394_v42  ;;  %v315_v41 = vld [vmem:[#allocation2 + $0x180] sm:$0xff] }
 0x167   : > { %1272 = vmatmul.mubr.bf16.gmra.mxu0 %v2396_v43  ;;  %1465 = vmatmul.mubr.bf16.gmra.mxu1 %v2397_v44 }
 0x168   : > { %1281 = vmatprep.mubr.bf16.mxu0 %v2398_v45  ;;  %1474 = vmatprep.mubr.bf16.mxu1 %v2400_v46  ;;  %v316_v46 = vld [vmem:[#allocation2 + $0x110] sm:$0xff] }
 0x16f   : > { %1282 = vmatmul.mubr.bf16.gmra.mxu0 %v2402_v47  ;;  %1475 = vmatmul.mubr.bf16.gmra.mxu1 %v2403_v48 }
 0x170   : > { %1291 = vmatprep.mubr.bf16.mxu0 %v2404_v49  ;;  %1484 = vmatprep.mubr.bf16.mxu1 %v2406_v50 }
 0x177   : > { %1292 = vmatmul.mubr.bf16.gmra.mxu0 %v2408_v51  ;;  %1485 = vmatmul.mubr.bf16.gmra.mxu1 %v2409_v52  ;;  %v317_v51 = vld [vmem:[#allocation2 + $0x118] sm:$0xff] }
 0x178   : > { %1301 = vmatprep.mubr.bf16.mxu0 %v2410_v53  ;;  %1494 = vmatprep.mubr.bf16.mxu1 %v2412_v54 }
 0x17f   : > { %1302 = vmatmul.mubr.bf16.gmra.mxu0 %v2414_v55  ;;  %1495 = vmatmul.mubr.bf16.gmra.mxu1 %v2415_v56  ;;  %v318_v56 = vld [vmem:[#allocation2 + $0x98] sm:$0xff] }
 0x180   : > { %1311 = vmatprep.mubr.bf16.mxu0 %v2416_v57  ;;  %1504 = vmatprep.mubr.bf16.mxu1 %v2418_v58 }
 0x187   : > { %1312 = vmatmul.mubr.bf16.gmra.mxu0 %v2420_v59  ;;  %1505 = vmatmul.mubr.bf16.gmra.mxu1 %v2421_v60 }
 0x188   : > { %1321 = vmatprep.mubr.bf16.mxu0 %v2422_v61  ;;  %1514 = vmatprep.mubr.bf16.mxu1 %v2424_v62  ;;  %v319_v61 = vld [vmem:[#allocation2 + $0x120] sm:$0xff] }
 0x18f   : > { %1322 = vmatmul.mubr.bf16.gmra.mxu0 %v2426_v63  ;;  %1515 = vmatmul.mubr.bf16.gmra.mxu1 %v2427_v0 }
 0x1d7   : > { %v1173_v1 = vpop.f32.mrf.mxu0  ;;  %v1366_v3 = vpop.f32.mrf.mxu1 }
 0x1d8   : > { %v1367_v4 = vadd.f32 %v1366_v3, %v1173_v1 }
 0x1d9   : > { %v1175_v5 = vpop.f32.mrf.mxu0  ;;  %v1368_v7 = vpop.f32.mrf.mxu1 }
 0x1da   : > { %v1525_v8 = vadd.f32 %v1367_v4, %v307_v2  ;;  %v1369_v9 = vadd.f32 %v1368_v7, %v1175_v5  ;;  %v320_v2 = vld [vmem:[#allocation2 + $0x150] sm:$0xff]  ;;  %v321_v7 = vld [vmem:[#allocation2 + $0x108] sm:$0xff] }
 0x1db   : > { %v1177_v10 = vpop.f32.mrf.mxu0  ;;  %v1370_v12 = vpop.f32.mrf.mxu1 }
 0x1dc   : > { %1589 = vst [vmem:[#allocation2 + $0xb0] sm:$0xff] %v1525_v8  ;;  %v1526_v13 = vadd.f32 %v1369_v9, %v308_v6  ;;  %v1371_v14 = vadd.f32 %v1370_v12, %v1177_v10  ;;  %v322_v12 = vld [vmem:[#allocation2 + $0x60] sm:$0xff] }
 0x1dd   : > { %v1179_v15 = vpop.f32.mrf.mxu0  ;;  %v1372_v17 = vpop.f32.mrf.mxu1 }
 0x1de   : > { %1590 = vst [vmem:[#allocation2 + $0x1b0] sm:$0xff] %v1526_v13  ;;  %v1527_v18 = vadd.f32 %v1371_v14, %v309_v11  ;;  %v1373_v19 = vadd.f32 %v1372_v17, %v1179_v15  ;;  %v323_v17 = vld [vmem:[#allocation2 + $0xe0] sm:$0xff] }
 0x1df   : > { %v1183_v20 = vpop.f32.mrf.mxu0  ;;  %v1376_v22 = vpop.f32.mrf.mxu1 }
 0x1e0   : > { %1591 = vst [vmem:[#allocation2 + $0xd8] sm:$0xff] %v1527_v18  ;;  %v1528_v23 = vadd.f32 %v1373_v19, %v310_v16  ;;  %v1377_v24 = vadd.f32 %v1376_v22, %v1183_v20  ;;  %v324_v22 = vld [vmem:[#allocation2 + $0x188] sm:$0xff] }
 0x1e1   : > { %v1185_v25 = vpop.f32.mrf.mxu0  ;;  %v1378_v27 = vpop.f32.mrf.mxu1 }
 0x1e2   : > { %1592 = vst [vmem:[#allocation2 + $0x18] sm:$0xff] %v1528_v23  ;;  %v1529_v28 = vadd.f32 %v1377_v24, %v311_v21  ;;  %v1379_v29 = vadd.f32 %v1378_v27, %v1185_v25  ;;  %v325_v27 = vld [vmem:[#allocation2 + $0x138] sm:$0xff] }
 0x1e3   : > { %v1187_v30 = vpop.f32.mrf.mxu0  ;;  %v1380_v32 = vpop.f32.mrf.mxu1 }
 0x1e4   : > { %1593 = vst [vmem:[#allocation2 + $0x50] sm:$0xff] %v1529_v28  ;;  %v1530_v33 = vadd.f32 %v1379_v29, %v312_v26  ;;  %v1381_v34 = vadd.f32 %v1380_v32, %v1187_v30  ;;  %v326_v32 = vld [vmem:[#allocation2 + $0x140] sm:$0xff] }
 0x1e5   : > { %v1189_v35 = vpop.f32.mrf.mxu0  ;;  %v1382_v37 = vpop.f32.mrf.mxu1 }
 0x1e6   : > { %1594 = vst [vmem:[#allocation2 + $0x168] sm:$0xff] %v1530_v33  ;;  %v1531_v38 = vadd.f32 %v1381_v34, %v313_v31  ;;  %v1383_v39 = vadd.f32 %v1382_v37, %v1189_v35  ;;  %v327_v37 = vld [vmem:[#allocation2 + $0x80] sm:$0xff] }
 0x1e7   : > { %v1193_v40 = vpop.f32.mrf.mxu0  ;;  %v1386_v42 = vpop.f32.mrf.mxu1 }
 0x1e8   : > { %1595 = vst [vmem:[#allocation2 + $0x130] sm:$0xff] %v1531_v38  ;;  %v1532_v43 = vadd.f32 %v1383_v39, %v314_v36  ;;  %v1387_v44 = vadd.f32 %v1386_v42, %v1193_v40  ;;  %v328_v42 = vld [vmem:[#allocation2 + $0x1a8] sm:$0xff] }
 0x1e9   : > { %v1195_v45 = vpop.f32.mrf.mxu0  ;;  %v1388_v47 = vpop.f32.mrf.mxu1 }
 0x1ea   : > { %1596 = vst [vmem:[#allocation2 + $0x48] sm:$0xff] %v1532_v43  ;;  %v1533_v48 = vadd.f32 %v1387_v44, %v315_v41  ;;  %v1389_v49 = vadd.f32 %v1388_v47, %v1195_v45  ;;  %v329_v47 = vld [vmem:[#allocation2 + $0x1b8] sm:$0xff] }
 0x1eb   : > { %v1197_v50 = vpop.f32.mrf.mxu0  ;;  %v1390_v52 = vpop.f32.mrf.mxu1 }
 0x1ec   : > { %1597 = vst [vmem:[#allocation2 + $0x180] sm:$0xff] %v1533_v48  ;;  %v1534_v53 = vadd.f32 %v1389_v49, %v316_v46  ;;  %v1391_v54 = vadd.f32 %v1390_v52, %v1197_v50  ;;  %v330_v52 = vld [vmem:[#allocation2 + $0x28] sm:$0xff] }
 0x1ed   : > { %v1199_v55 = vpop.f32.mrf.mxu0  ;;  %v1392_v57 = vpop.f32.mrf.mxu1 }
 0x1ee   : > { %1598 = vst [vmem:[#allocation2 + $0x110] sm:$0xff] %v1534_v53  ;;  %v1535_v58 = vadd.f32 %v1391_v54, %v317_v51  ;;  %v1393_v59 = vadd.f32 %v1392_v57, %v1199_v55  ;;  %v331_v57 = vld [vmem:[#allocation2 + $0x1e8] sm:$0xff] }
 0x1ef   : > { %v1203_v60 = vpop.f32.mrf.mxu0  ;;  %v1396_v62 = vpop.f32.mrf.mxu1 }
 0x1f0   : > { %1599 = vst [vmem:[#allocation2 + $0x118] sm:$0xff] %v1535_v58  ;;  %v1536_v63 = vadd.f32 %v1393_v59, %v318_v56  ;;  %v1397_v0 = vadd.f32 %v1396_v62, %v1203_v60  ;;  %v332_v62 = vld [vmem:[#allocation2 + $0xf8] sm:$0xff] }
 0x1f1   : > { %v1205_v1 = vpop.f32.mrf.mxu0  ;;  %v1398_v3 = vpop.f32.mrf.mxu1 }
 0x1f2   : > { %1600 = vst [vmem:[#allocation2 + $0x98] sm:$0xff] %v1536_v63  ;;  %v1537_v4 = vadd.f32 %v1397_v0, %v319_v61  ;;  %v1399_v5 = vadd.f32 %v1398_v3, %v1205_v1  ;;  %v333_v3 = vld [vmem:[#allocation2 + $0x160] sm:$0xff] }
 0x1f3   : > { %v1207_v6 = vpop.f32.mrf.mxu0  ;;  %v1400_v8 = vpop.f32.mrf.mxu1 }
 0x1f4   : > { %1601 = vst [vmem:[#allocation2 + $0x120] sm:$0xff] %v1537_v4  ;;  %v1538_v9 = vadd.f32 %v1399_v5, %v320_v2  ;;  %v1401_v10 = vadd.f32 %v1400_v8, %v1207_v6  ;;  %v334_v8 = vld [vmem:[#allocation2 + $0x30] sm:$0xff] }
 0x1f5   : > { %v1209_v11 = vpop.f32.mrf.mxu0  ;;  %v1402_v13 = vpop.f32.mrf.mxu1 }
 0x1f6   : > { %1602 = vst [vmem:[#allocation2 + $0x150] sm:$0xff] %v1538_v9  ;;  %v1539_v14 = vadd.f32 %v1401_v10, %v321_v7  ;;  %v1403_v15 = vadd.f32 %v1402_v13, %v1209_v11  ;;  %v335_v13 = vld [vmem:[#allocation2 + $0x1e0] sm:$0xff] }
 0x1f7   : > { %v1213_v16 = vpop.f32.mrf.mxu0  ;;  %v1406_v18 = vpop.f32.mrf.mxu1 }
 0x1f8   : > { %1603 = vst [vmem:[#allocation2 + $0x108] sm:$0xff] %v1539_v14  ;;  %v1540_v19 = vadd.f32 %v1403_v15, %v322_v12  ;;  %v1407_v20 = vadd.f32 %v1406_v18, %v1213_v16  ;;  %v336_v18 = vld [vmem:[#allocation2] sm:$0xff] }
 0x1f9   : > { %v1215_v21 = vpop.f32.mrf.mxu0  ;;  %v1408_v23 = vpop.f32.mrf.mxu1 }
 0x1fa   : > { %1604 = vst [vmem:[#allocation2 + $0x60] sm:$0xff] %v1540_v19  ;;  %v1541_v24 = vadd.f32 %v1407_v20, %v323_v17  ;;  %v1409_v25 = vadd.f32 %v1408_v23, %v1215_v21  ;;  %v337_v23 = vld [vmem:[#allocation2 + $0xf0] sm:$0xff] }
 0x1fb   : > { %v1217_v26 = vpop.f32.mrf.mxu0  ;;  %v1410_v28 = vpop.f32.mrf.mxu1 }
 0x1fc   : > { %1605 = vst [vmem:[#allocation2 + $0xe0] sm:$0xff] %v1541_v24  ;;  %v1542_v29 = vadd.f32 %v1409_v25, %v324_v22  ;;  %v1411_v30 = vadd.f32 %v1410_v28, %v1217_v26  ;;  %v338_v28 = vld [vmem:[#allocation2 + $0x8] sm:$0xff] }
 0x1fd   : > { %v1219_v31 = vpop.f32.mrf.mxu0  ;;  %v1412_v33 = vpop.f32.mrf.mxu1 }
 0x1fe   : > { %1606 = vst [vmem:[#allocation2 + $0x188] sm:$0xff] %v1542_v29  ;;  %v1543_v34 = vadd.f32 %v1411_v30, %v325_v27  ;;  %v1413_v35 = vadd.f32 %v1412_v33, %v1219_v31  ;;  %v339_v33 = vld [vmem:[#allocation2 + $0x148] sm:$0xff] }
 0x1ff   : > { %v1223_v36 = vpop.f32.mrf.mxu0  ;;  %v1416_v38 = vpop.f32.mrf.mxu1 }
 0x200   : > { %1607 = vst [vmem:[#allocation2 + $0x138] sm:$0xff] %v1543_v34  ;;  %v1544_v39 = vadd.f32 %v1413_v35, %v326_v32  ;;  %v1417_v40 = vadd.f32 %v1416_v38, %v1223_v36  ;;  %v340_v38 = vld [vmem:[#allocation2 + $0x1d0] sm:$0xff] }
 0x201   : > { %v1225_v41 = vpop.f32.mrf.mxu0  ;;  %v1418_v43 = vpop.f32.mrf.mxu1 }
 0x202   : > { %1608 = vst [vmem:[#allocation2 + $0x140] sm:$0xff] %v1544_v39  ;;  %v1545_v44 = vadd.f32 %v1417_v40, %v327_v37  ;;  %v1419_v45 = vadd.f32 %v1418_v43, %v1225_v41  ;;  %v341_v43 = vld [vmem:[#allocation2 + $0x100] sm:$0xff] }
 0x203   : > { %v1227_v46 = vpop.f32.mrf.mxu0  ;;  %v1420_v48 = vpop.f32.mrf.mxu1 }
 0x204   : > { %1609 = vst [vmem:[#allocation2 + $0x80] sm:$0xff] %v1545_v44  ;;  %v1546_v49 = vadd.f32 %v1419_v45, %v328_v42  ;;  %v1421_v50 = vadd.f32 %v1420_v48, %v1227_v46  ;;  %v342_v48 = vld [vmem:[#allocation2 + $0xc8] sm:$0xff] }
 0x205   : > { %v1229_v51 = vpop.f32.mrf.mxu0  ;;  %v1422_v53 = vpop.f32.mrf.mxu1 }
 0x206   : > { %1610 = vst [vmem:[#allocation2 + $0x1a8] sm:$0xff] %v1546_v49  ;;  %v1547_v54 = vadd.f32 %v1421_v50, %v329_v47  ;;  %v1423_v55 = vadd.f32 %v1422_v53, %v1229_v51  ;;  %v343_v53 = vld [vmem:[#allocation2 + $0x40] sm:$0xff] }
 0x207   : > { %v1233_v56 = vpop.f32.mrf.mxu0  ;;  %v1426_v58 = vpop.f32.mrf.mxu1 }
 0x208   : > { %1611 = vst [vmem:[#allocation2 + $0x1b8] sm:$0xff] %v1547_v54  ;;  %v1548_v59 = vadd.f32 %v1423_v55, %v330_v52  ;;  %v1427_v60 = vadd.f32 %v1426_v58, %v1233_v56  ;;  %v344_v58 = vld [vmem:[#allocation2 + $0x1f8] sm:$0xff] }
 0x209   : > { %v1235_v61 = vpop.f32.mrf.mxu0  ;;  %v1428_v63 = vpop.f32.mrf.mxu1 }
 0x20a   : > { %1612 = vst [vmem:[#allocation2 + $0x28] sm:$0xff] %v1548_v59  ;;  %v1549_v0 = vadd.f32 %v1427_v60, %v331_v57  ;;  %v1429_v1 = vadd.f32 %v1428_v63, %v1235_v61  ;;  %v345_v63 = vld [vmem:[#allocation2 + $0x20] sm:$0xff] }
 0x20b   : > { %v1237_v2 = vpop.f32.mrf.mxu0  ;;  %v1430_v4 = vpop.f32.mrf.mxu1 }
 0x20c   : > { %1613 = vst [vmem:[#allocation2 + $0x1e8] sm:$0xff] %v1549_v0  ;;  %v1550_v5 = vadd.f32 %v1429_v1, %v332_v62  ;;  %v1431_v6 = vadd.f32 %v1430_v4, %v1237_v2  ;;  %v346_v4 = vld [vmem:[#allocation2 + $0x128] sm:$0xff] }
 0x20d   : > { %v1239_v7 = vpop.f32.mrf.mxu0  ;;  %v1432_v9 = vpop.f32.mrf.mxu1 }
 0x20e   : > { %1614 = vst [vmem:[#allocation2 + $0xf8] sm:$0xff] %v1550_v5  ;;  %v1551_v10 = vadd.f32 %v1431_v6, %v333_v3  ;;  %v1433_v11 = vadd.f32 %v1432_v9, %v1239_v7  ;;  %v347_v9 = vld [vmem:[#allocation2 + $0x1a0] sm:$0xff] }
 0x20f   : > { %v1243_v12 = vpop.f32.mrf.mxu0  ;;  %v1436_v14 = vpop.f32.mrf.mxu1 }
 0x210   : > { %1615 = vst [vmem:[#allocation2 + $0x160] sm:$0xff] %v1551_v10  ;;  %v1552_v15 = vadd.f32 %v1433_v11, %v334_v8  ;;  %v1437_v16 = vadd.f32 %v1436_v14, %v1243_v12  ;;  %v348_v14 = vld [vmem:[#allocation2 + $0x1f0] sm:$0xff] }
 0x211   : > { %v1245_v17 = vpop.f32.mrf.mxu0  ;;  %v1438_v19 = vpop.f32.mrf.mxu1 }
 0x212   : > { %1616 = vst [vmem:[#allocation2 + $0x30] sm:$0xff] %v1552_v15  ;;  %v1553_v20 = vadd.f32 %v1437_v16, %v335_v13  ;;  %v1439_v21 = vadd.f32 %v1438_v19, %v1245_v17  ;;  %v349_v19 = vld [vmem:[#allocation2 + $0xe8] sm:$0xff] }
 0x213   : > { %v1247_v22 = vpop.f32.mrf.mxu0  ;;  %v1440_v24 = vpop.f32.mrf.mxu1 }
 0x214   : > { %1617 = vst [vmem:[#allocation2 + $0x1e0] sm:$0xff] %v1553_v20  ;;  %v1554_v25 = vadd.f32 %v1439_v21, %v336_v18  ;;  %v1441_v26 = vadd.f32 %v1440_v24, %v1247_v22  ;;  %v350_v24 = vld [vmem:[#allocation2 + $0x78] sm:$0xff] }
 0x215   : > { %v1249_v27 = vpop.f32.mrf.mxu0  ;;  %v1442_v29 = vpop.f32.mrf.mxu1 }
 0x216   : > { %1618 = vst [vmem:[#allocation2] sm:$0xff] %v1554_v25  ;;  %v1555_v30 = vadd.f32 %v1441_v26, %v337_v23  ;;  %v1443_v31 = vadd.f32 %v1442_v29, %v1249_v27  ;;  %v351_v29 = vld [vmem:[#allocation2 + $0x70] sm:$0xff] }
 0x217   : > { %v1253_v32 = vpop.f32.mrf.mxu0  ;;  %v1446_v34 = vpop.f32.mrf.mxu1 }
 0x218   : > { %1619 = vst [vmem:[#allocation2 + $0xf0] sm:$0xff] %v1555_v30  ;;  %v1556_v35 = vadd.f32 %v1443_v31, %v338_v28  ;;  %v1447_v36 = vadd.f32 %v1446_v34, %v1253_v32  ;;  %v352_v34 = vld [vmem:[#allocation2 + $0x90] sm:$0xff] }
 0x219   : > { %v1255_v37 = vpop.f32.mrf.mxu0  ;;  %v1448_v39 = vpop.f32.mrf.mxu1 }
 0x21a   : > { %1620 = vst [vmem:[#allocation2 + $0x8] sm:$0xff] %v1556_v35  ;;  %v1557_v40 = vadd.f32 %v1447_v36, %v339_v33  ;;  %v1449_v41 = vadd.f32 %v1448_v39, %v1255_v37  ;;  %v353_v39 = vld [vmem:[#allocation2 + $0x1d8] sm:$0xff] }
 0x21b   : > { %v1257_v42 = vpop.f32.mrf.mxu0  ;;  %v1450_v44 = vpop.f32.mrf.mxu1 }
 0x21c   : > { %1621 = vst [vmem:[#allocation2 + $0x148] sm:$0xff] %v1557_v40  ;;  %v1558_v45 = vadd.f32 %v1449_v41, %v340_v38  ;;  %v1451_v46 = vadd.f32 %v1450_v44, %v1257_v42  ;;  %v354_v44 = vld [vmem:[#allocation2 + $0xd0] sm:$0xff] }
 0x21d   : > { %v1259_v47 = vpop.f32.mrf.mxu0  ;;  %v1452_v49 = vpop.f32.mrf.mxu1 }
 0x21e   : > { %1622 = vst [vmem:[#allocation2 + $0x1d0] sm:$0xff] %v1558_v45  ;;  %v1559_v50 = vadd.f32 %v1451_v46, %v341_v43  ;;  %v1453_v51 = vadd.f32 %v1452_v49, %v1259_v47  ;;  %v355_v49 = vld [vmem:[#allocation2 + $0xb8] sm:$0xff] }
 0x21f   : > { %v1263_v52 = vpop.f32.mrf.mxu0  ;;  %v1456_v54 = vpop.f32.mrf.mxu1 }
 0x220   : > { %1623 = vst [vmem:[#allocation2 + $0x100] sm:$0xff] %v1559_v50  ;;  %v1560_v55 = vadd.f32 %v1453_v51, %v342_v48  ;;  %v1457_v56 = vadd.f32 %v1456_v54, %v1263_v52  ;;  %v356_v54 = vld [vmem:[#allocation2 + $0x88] sm:$0xff] }
 0x221   : > { %v1265_v57 = vpop.f32.mrf.mxu0  ;;  %v1458_v59 = vpop.f32.mrf.mxu1 }
 0x222   : > { %1624 = vst [vmem:[#allocation2 + $0xc8] sm:$0xff] %v1560_v55  ;;  %v1561_v60 = vadd.f32 %v1457_v56, %v343_v53  ;;  %v1459_v61 = vadd.f32 %v1458_v59, %v1265_v57  ;;  %v357_v59 = vld [vmem:[#allocation2 + $0xa8] sm:$0xff] }
 0x223   : > { %v1267_v62 = vpop.f32.mrf.mxu0  ;;  %v1460_v0 = vpop.f32.mrf.mxu1 }
 0x224   : > { %1625 = vst [vmem:[#allocation2 + $0x40] sm:$0xff] %v1561_v60  ;;  %v1562_v1 = vadd.f32 %v1459_v61, %v344_v58  ;;  %v1461_v2 = vadd.f32 %v1460_v0, %v1267_v62  ;;  %v358_v0 = vld [vmem:[#allocation2 + $0x1c8] sm:$0xff] }
 0x225   : > { %v1269_v3 = vpop.f32.mrf.mxu0  ;;  %v1462_v5 = vpop.f32.mrf.mxu1 }
 0x226   : > { %1626 = vst [vmem:[#allocation2 + $0x1f8] sm:$0xff] %v1562_v1  ;;  %v1563_v6 = vadd.f32 %v1461_v2, %v345_v63  ;;  %v1463_v7 = vadd.f32 %v1462_v5, %v1269_v3  ;;  %v359_v5 = vld [vmem:[#allocation2 + $0x170] sm:$0xff] }
 0x227   : > { %v1273_v8 = vpop.f32.mrf.mxu0  ;;  %v1466_v10 = vpop.f32.mrf.mxu1 }
 0x228   : > { %1627 = vst [vmem:[#allocation2 + $0x20] sm:$0xff] %v1563_v6  ;;  %v1564_v11 = vadd.f32 %v1463_v7, %v346_v4  ;;  %v1467_v12 = vadd.f32 %v1466_v10, %v1273_v8  ;;  %v360_v10 = vld [vmem:[#allocation2 + $0x178] sm:$0xff] }
 0x229   : > { %v1275_v13 = vpop.f32.mrf.mxu0  ;;  %v1468_v15 = vpop.f32.mrf.mxu1 }
 0x22a   : > { %1628 = vst [vmem:[#allocation2 + $0x128] sm:$0xff] %v1564_v11  ;;  %v1565_v16 = vadd.f32 %v1467_v12, %v347_v9  ;;  %v1469_v17 = vadd.f32 %v1468_v15, %v1275_v13  ;;  %v361_v15 = vld [vmem:[#allocation2 + $0x68] sm:$0xff] }
 0x22b   : > { %v1277_v18 = vpop.f32.mrf.mxu0  ;;  %v1470_v20 = vpop.f32.mrf.mxu1 }
 0x22c   : > { %1629 = vst [vmem:[#allocation2 + $0x1a0] sm:$0xff] %v1565_v16  ;;  %v1566_v21 = vadd.f32 %v1469_v17, %v348_v14  ;;  %v1471_v22 = vadd.f32 %v1470_v20, %v1277_v18  ;;  %v362_v20 = vld [vmem:[#allocation2 + $0x190] sm:$0xff] }
 0x22d   : > { %v1279_v23 = vpop.f32.mrf.mxu0  ;;  %v1472_v25 = vpop.f32.mrf.mxu1 }
 0x22e   : > { %1630 = vst [vmem:[#allocation2 + $0x1f0] sm:$0xff] %v1566_v21  ;;  %v1567_v26 = vadd.f32 %v1471_v22, %v349_v19  ;;  %v1473_v27 = vadd.f32 %v1472_v25, %v1279_v23  ;;  %v363_v25 = vld [vmem:[#allocation2 + $0x198] sm:$0xff] }
 0x22f   : > { %v1283_v28 = vpop.f32.mrf.mxu0  ;;  %v1476_v30 = vpop.f32.mrf.mxu1 }
 0x230   : > { %1631 = vst [vmem:[#allocation2 + $0xe8] sm:$0xff] %v1567_v26  ;;  %v1568_v31 = vadd.f32 %v1473_v27, %v350_v24  ;;  %v1477_v32 = vadd.f32 %v1476_v30, %v1283_v28  ;;  %v364_v30 = vld [vmem:[#allocation2 + $0x38] sm:$0xff] }
 0x231   : > { %v1285_v33 = vpop.f32.mrf.mxu0  ;;  %v1478_v35 = vpop.f32.mrf.mxu1 }
 0x232   : > { %1632 = vst [vmem:[#allocation2 + $0x78] sm:$0xff] %v1568_v31  ;;  %v1569_v36 = vadd.f32 %v1477_v32, %v351_v29  ;;  %v1479_v37 = vadd.f32 %v1478_v35, %v1285_v33  ;;  %v365_v35 = vld [vmem:[#allocation2 + $0xc0] sm:$0xff] }
 0x233   : > { %v1287_v38 = vpop.f32.mrf.mxu0  ;;  %v1480_v40 = vpop.f32.mrf.mxu1 }
 0x234   : > { %1633 = vst [vmem:[#allocation2 + $0x70] sm:$0xff] %v1569_v36  ;;  %v1570_v41 = vadd.f32 %v1479_v37, %v352_v34  ;;  %v1481_v42 = vadd.f32 %v1480_v40, %v1287_v38  ;;  %v366_v40 = vld [vmem:[#allocation2 + $0x1c0] sm:$0xff] }
 0x235   : > { %v1289_v43 = vpop.f32.mrf.mxu0  ;;  %v1482_v45 = vpop.f32.mrf.mxu1 }
 0x236   : > { %1634 = vst [vmem:[#allocation2 + $0x90] sm:$0xff] %v1570_v41  ;;  %v1571_v46 = vadd.f32 %v1481_v42, %v353_v39  ;;  %v1483_v47 = vadd.f32 %v1482_v45, %v1289_v43  ;;  %v367_v45 = vld [vmem:[#allocation2 + $0x158] sm:$0xff] }
 0x237   : > { %v1293_v48 = vpop.f32.mrf.mxu0  ;;  %v1486_v50 = vpop.f32.mrf.mxu1 }
 0x238   : > { %1635 = vst [vmem:[#allocation2 + $0x1d8] sm:$0xff] %v1571_v46  ;;  %v1572_v51 = vadd.f32 %v1483_v47, %v354_v44  ;;  %v1487_v52 = vadd.f32 %v1486_v50, %v1293_v48  ;;  %v368_v50 = vld [vmem:[#allocation2 + $0x10] sm:$0xff] }
 0x239   : > { %v1295_v53 = vpop.f32.mrf.mxu0  ;;  %v1488_v55 = vpop.f32.mrf.mxu1 }
 0x23a   : > { %1636 = vst [vmem:[#allocation2 + $0xd0] sm:$0xff] %v1572_v51  ;;  %v1573_v56 = vadd.f32 %v1487_v52, %v355_v49  ;;  %v1489_v57 = vadd.f32 %v1488_v55, %v1295_v53  ;;  %v369_v55 = vld [vmem:[#allocation2 + $0x58] sm:$0xff] }
 0x23b   : > { %v1297_v58 = vpop.f32.mrf.mxu0  ;;  %v1490_v60 = vpop.f32.mrf.mxu1 }
 0x23c   : > { %1637 = vst [vmem:[#allocation2 + $0xb8] sm:$0xff] %v1573_v56  ;;  %v1574_v61 = vadd.f32 %v1489_v57, %v356_v54  ;;  %v1491_v62 = vadd.f32 %v1490_v60, %v1297_v58  ;;  %v370_v60 = vld [vmem:[#allocation2 + $0xa0] sm:$0xff] }
 0x23d   : > { %v1299_v63 = vpop.f32.mrf.mxu0  ;;  %v1492_v1 = vpop.f32.mrf.mxu1 }
 0x23e   : > { %1638 = vst [vmem:[#allocation2 + $0x88] sm:$0xff] %v1574_v61  ;;  %v1575_v2 = vadd.f32 %v1491_v62, %v357_v59  ;;  %v1493_v3 = vadd.f32 %v1492_v1, %v1299_v63 }
 0x23f   : > { %v1303_v4 = vpop.f32.mrf.mxu0  ;;  %v1496_v6 = vpop.f32.mrf.mxu1 }
 0x240   : > { %1639 = vst [vmem:[#allocation2 + $0xa8] sm:$0xff] %v1575_v2  ;;  %v1576_v7 = vadd.f32 %v1493_v3, %v358_v0  ;;  %v1497_v8 = vadd.f32 %v1496_v6, %v1303_v4 }
 0x241   : > { %v1305_v9 = vpop.f32.mrf.mxu0  ;;  %v1498_v11 = vpop.f32.mrf.mxu1 }
 0x242   : > { %1640 = vst [vmem:[#allocation2 + $0x1c8] sm:$0xff] %v1576_v7  ;;  %v1577_v12 = vadd.f32 %v1497_v8, %v359_v5  ;;  %v1499_v13 = vadd.f32 %v1498_v11, %v1305_v9 }
 0x243   : > { %v1307_v14 = vpop.f32.mrf.mxu0  ;;  %v1500_v16 = vpop.f32.mrf.mxu1 }
 0x244   : > { %1641 = vst [vmem:[#allocation2 + $0x170] sm:$0xff] %v1577_v12  ;;  %v1578_v17 = vadd.f32 %v1499_v13, %v360_v10  ;;  %v1501_v18 = vadd.f32 %v1500_v16, %v1307_v14 }
 0x245   : > { %v1309_v19 = vpop.f32.mrf.mxu0  ;;  %v1502_v21 = vpop.f32.mrf.mxu1 }
 0x246   : > { %1642 = vst [vmem:[#allocation2 + $0x178] sm:$0xff] %v1578_v17  ;;  %v1579_v22 = vadd.f32 %v1501_v18, %v361_v15  ;;  %v1503_v23 = vadd.f32 %v1502_v21, %v1309_v19 }
 0x247   : > { %v1313_v24 = vpop.f32.mrf.mxu0  ;;  %v1506_v26 = vpop.f32.mrf.mxu1 }
 0x248   : > { %1643 = vst [vmem:[#allocation2 + $0x68] sm:$0xff] %v1579_v22  ;;  %v1580_v27 = vadd.f32 %v1503_v23, %v362_v20  ;;  %v1507_v28 = vadd.f32 %v1506_v26, %v1313_v24 }
 0x249   : > { %v1315_v29 = vpop.f32.mrf.mxu0  ;;  %v1508_v31 = vpop.f32.mrf.mxu1 }
 0x24a   : > { %1644 = vst [vmem:[#allocation2 + $0x190] sm:$0xff] %v1580_v27  ;;  %v1581_v32 = vadd.f32 %v1507_v28, %v363_v25  ;;  %v1509_v33 = vadd.f32 %v1508_v31, %v1315_v29 }
 0x24b   : > { %v1317_v34 = vpop.f32.mrf.mxu0  ;;  %v1510_v36 = vpop.f32.mrf.mxu1 }
 0x24c   : > { %1645 = vst [vmem:[#allocation2 + $0x198] sm:$0xff] %v1581_v32  ;;  %v1582_v37 = vadd.f32 %v1509_v33, %v364_v30  ;;  %v1511_v38 = vadd.f32 %v1510_v36, %v1317_v34 }
 0x24d   : > { %v1319_v39 = vpop.f32.mrf.mxu0  ;;  %v1512_v41 = vpop.f32.mrf.mxu1 }
 0x24e   : > { %1646 = vst [vmem:[#allocation2 + $0x38] sm:$0xff] %v1582_v37  ;;  %v1583_v42 = vadd.f32 %v1511_v38, %v365_v35  ;;  %v1513_v43 = vadd.f32 %v1512_v41, %v1319_v39 }
 0x24f   : > { %v1323_v44 = vpop.f32.mrf.mxu0  ;;  %v1516_v46 = vpop.f32.mrf.mxu1 }
 0x250   : > { %1647 = vst [vmem:[#allocation2 + $0xc0] sm:$0xff] %v1583_v42  ;;  %v1584_v47 = vadd.f32 %v1513_v43, %v366_v40  ;;  %v1517_v48 = vadd.f32 %v1516_v46, %v1323_v44 }
 0x251   : > { %v1325_v49 = vpop.f32.mrf.mxu0  ;;  %v1518_v51 = vpop.f32.mrf.mxu1 }
 0x252   : > { %1648 = vst [vmem:[#allocation2 + $0x1c0] sm:$0xff] %v1584_v47  ;;  %v1585_v52 = vadd.f32 %v1517_v48, %v367_v45  ;;  %v1519_v53 = vadd.f32 %v1518_v51, %v1325_v49 }
 0x253   : > { %v1327_v54 = vpop.f32.mrf.mxu0  ;;  %v1520_v56 = vpop.f32.mrf.mxu1 }
 0x254   : > { %1649 = vst [vmem:[#allocation2 + $0x158] sm:$0xff] %v1585_v52  ;;  %v1586_v57 = vadd.f32 %v1519_v53, %v368_v50  ;;  %v1521_v58 = vadd.f32 %v1520_v56, %v1327_v54 }
 0x255   : > { %v1329_v59 = vpop.f32.mrf.mxu0  ;;  %v1522_v61 = vpop.f32.mrf.mxu1 }
 0x256   : > { %1650 = vst [vmem:[#allocation2 + $0x10] sm:$0xff] %v1586_v57  ;;  %v1587_v62 = vadd.f32 %v1521_v58, %v369_v55  ;;  %v1523_v63 = vadd.f32 %v1522_v61, %v1329_v59  ;;  %1656 = sbr.rel (%p2071_p8) target bundleno = 636 (0x27c), region = 44 }
 0x258   : > { %1651 = vst [vmem:[#allocation2 + $0x58] sm:$0xff] %v1587_v62  ;;  %v1588_v0 = vadd.f32 %v1523_v63, %v370_v60 }
 0x25a   : > { %1652 = vst [vmem:[#allocation2 + $0xa0] sm:$0xff] %v1588_v0 }
 0x25b   : > { %v1657_v1 = vld [vmem:[#allocation2 + $0xb0] sm:$0xff]  ;;  %v1659_v3 = vld [vmem:[#allocation2 + $0xd8] sm:$0xff]  ;;  %v1662_v6 = vld [vmem:[#allocation2 + $0x168] sm:$0xff] }
 0x25c   : > { %v1658_v2 = vld [vmem:[#allocation2 + $0x1b0] sm:$0xff]  ;;  %1721 = vst [vmem:[%s2927_s6] sm:$0xff] %v1657_v1  ;;  %1723 = vst [vmem:[%s2927_s6 + $0x10] sm:$0xff] %v1659_v3  ;;  %v1660_v4 = vld [vmem:[#allocation2 + $0x18] sm:$0xff] }
 0x25d   : > { %1722 = vst [vmem:[%s2927_s6 + $0x8] sm:$0xff] %v1658_v2  ;;  %v1661_v5 = vld [vmem:[#allocation2 + $0x50] sm:$0xff]  ;;  %1724 = vst [vmem:[%s2927_s6 + $0x18] sm:$0xff] %v1660_v4  ;;  %v1664_v8 = vld [vmem:[#allocation2 + $0x48] sm:$0xff] }
 0x25e   : > { %1725 = vst [vmem:[%s2927_s6 + $0x20] sm:$0xff] %v1661_v5  ;;  %1726 = vst [vmem:[%s2927_s6 + $0x28] sm:$0xff] %v1662_v6  ;;  %v1663_v7 = vld [vmem:[#allocation2 + $0x130] sm:$0xff]  ;;  %v1665_v9 = vld [vmem:[#allocation2 + $0x180] sm:$0xff] }
 0x25f   : > { %1727 = vst [vmem:[%s2927_s6 + $0x30] sm:$0xff] %v1663_v7  ;;  %1728 = vst [vmem:[%s2927_s6 + $0x38] sm:$0xff] %v1664_v8  ;;  %v1666_v10 = vld [vmem:[#allocation2 + $0x110] sm:$0xff]  ;;  %v1667_v11 = vld [vmem:[#allocation2 + $0x118] sm:$0xff] }
 0x260   : > { %1729 = vst [vmem:[%s2927_s6 + $0x40] sm:$0xff] %v1665_v9  ;;  %v1668_v12 = vld [vmem:[#allocation2 + $0x98] sm:$0xff]  ;;  %1730 = vst [vmem:[%s2927_s6 + $0x48] sm:$0xff] %v1666_v10  ;;  %v1669_v13 = vld [vmem:[#allocation2 + $0x120] sm:$0xff] }
 0x261   : > { %1731 = vst [vmem:[%s2927_s6 + $0x50] sm:$0xff] %v1667_v11  ;;  %1732 = vst [vmem:[%s2927_s6 + $0x58] sm:$0xff] %v1668_v12  ;;  %v1670_v14 = vld [vmem:[#allocation2 + $0x150] sm:$0xff]  ;;  %v1671_v15 = vld [vmem:[#allocation2 + $0x108] sm:$0xff] }
 0x262   : > { %1733 = vst [vmem:[%s2927_s6 + $0x60] sm:$0xff] %v1669_v13  ;;  %1734 = vst [vmem:[%s2927_s6 + $0x68] sm:$0xff] %v1670_v14  ;;  %v1672_v16 = vld [vmem:[#allocation2 + $0x60] sm:$0xff]  ;;  %v1674_v18 = vld [vmem:[#allocation2 + $0x188] sm:$0xff] }
 0x263   : > { %1735 = vst [vmem:[%s2927_s6 + $0x70] sm:$0xff] %v1671_v15  ;;  %v1673_v17 = vld [vmem:[#allocation2 + $0xe0] sm:$0xff]  ;;  %1736 = vst [vmem:[%s2927_s6 + $0x78] sm:$0xff] %v1672_v16  ;;  %v1675_v19 = vld [vmem:[#allocation2 + $0x138] sm:$0xff] }
 0x264   : > { %1737 = vst [vmem:[%s2927_s6 + $0x80] sm:$0xff] %v1673_v17  ;;  %1738 = vst [vmem:[%s2927_s6 + $0x88] sm:$0xff] %v1674_v18  ;;  %v1676_v20 = vld [vmem:[#allocation2 + $0x140] sm:$0xff]  ;;  %v1678_v22 = vld [vmem:[#allocation2 + $0x1a8] sm:$0xff] }
 0x265   : > { %v1677_v21 = vld [vmem:[#allocation2 + $0x80] sm:$0xff]  ;;  %1739 = vst [vmem:[%s2927_s6 + $0x90] sm:$0xff] %v1675_v19  ;;  %1740 = vst [vmem:[%s2927_s6 + $0x98] sm:$0xff] %v1676_v20  ;;  %v1679_v23 = vld [vmem:[#allocation2 + $0x1b8] sm:$0xff] }
 0x266   : > { %1741 = vst [vmem:[%s2927_s6 + $0xa0] sm:$0xff] %v1677_v21  ;;  %v1680_v24 = vld [vmem:[#allocation2 + $0x28] sm:$0xff]  ;;  %1742 = vst [vmem:[%s2927_s6 + $0xa8] sm:$0xff] %v1678_v22  ;;  %v1682_v26 = vld [vmem:[#allocation2 + $0xf8] sm:$0xff] }
 0x267   : > { %1743 = vst [vmem:[%s2927_s6 + $0xb0] sm:$0xff] %v1679_v23  ;;  %1744 = vst [vmem:[%s2927_s6 + $0xb8] sm:$0xff] %v1680_v24  ;;  %v1681_v25 = vld [vmem:[#allocation2 + $0x1e8] sm:$0xff]  ;;  %v1683_v27 = vld [vmem:[#allocation2 + $0x160] sm:$0xff] }
 0x268   : > { %1745 = vst [vmem:[%s2927_s6 + $0xc0] sm:$0xff] %v1681_v25  ;;  %1746 = vst [vmem:[%s2927_s6 + $0xc8] sm:$0xff] %v1682_v26  ;;  %v1684_v28 = vld [vmem:[#allocation2 + $0x30] sm:$0xff]  ;;  %v1685_v29 = vld [vmem:[#allocation2 + $0x1e0] sm:$0xff] }
 0x269   : > { %1747 = vst [vmem:[%s2927_s6 + $0xd0] sm:$0xff] %v1683_v27  ;;  %v1686_v30 = vld [vmem:[#allocation2] sm:$0xff]  ;;  %1748 = vst [vmem:[%s2927_s6 + $0xd8] sm:$0xff] %v1684_v28  ;;  %v1687_v31 = vld [vmem:[#allocation2 + $0xf0] sm:$0xff] }
 0x26a   : > { %1749 = vst [vmem:[%s2927_s6 + $0xe0] sm:$0xff] %v1685_v29  ;;  %1750 = vst [vmem:[%s2927_s6 + $0xe8] sm:$0xff] %v1686_v30  ;;  %v1688_v32 = vld [vmem:[#allocation2 + $0x8] sm:$0xff]  ;;  %v1690_v34 = vld [vmem:[#allocation2 + $0x1d0] sm:$0xff] }
 0x26b   : > { %v1689_v33 = vld [vmem:[#allocation2 + $0x148] sm:$0xff]  ;;  %1751 = vst [vmem:[%s2927_s6 + $0xf0] sm:$0xff] %v1687_v31  ;;  %1752 = vst [vmem:[%s2927_s6 + $0xf8] sm:$0xff] %v1688_v32  ;;  %v1691_v35 = vld [vmem:[#allocation2 + $0x100] sm:$0xff] }
 0x26c   : > { %1753 = vst [vmem:[%s2927_s6 + $0x100] sm:$0xff] %v1689_v33  ;;  %v1692_v36 = vld [vmem:[#allocation2 + $0xc8] sm:$0xff]  ;;  %1754 = vst [vmem:[%s2927_s6 + $0x108] sm:$0xff] %v1690_v34  ;;  %v1693_v37 = vld [vmem:[#allocation2 + $0x40] sm:$0xff] }
 0x26d   : > { %1755 = vst [vmem:[%s2927_s6 + $0x110] sm:$0xff] %v1691_v35  ;;  %1756 = vst [vmem:[%s2927_s6 + $0x118] sm:$0xff] %v1692_v36  ;;  %v1694_v38 = vld [vmem:[#allocation2 + $0x1f8] sm:$0xff]  ;;  %v1695_v39 = vld [vmem:[#allocation2 + $0x20] sm:$0xff] }
 0x26e   : > { %1757 = vst [vmem:[%s2927_s6 + $0x120] sm:$0xff] %v1693_v37  ;;  %1758 = vst [vmem:[%s2927_s6 + $0x128] sm:$0xff] %v1694_v38  ;;  %v1696_v40 = vld [vmem:[#allocation2 + $0x128] sm:$0xff]  ;;  %v1697_v41 = vld [vmem:[#allocation2 + $0x1a0] sm:$0xff] }
 0x26f   : > { %1759 = vst [vmem:[%s2927_s6 + $0x130] sm:$0xff] %v1695_v39  ;;  %v1698_v42 = vld [vmem:[#allocation2 + $0x1f0] sm:$0xff]  ;;  %1760 = vst [vmem:[%s2927_s6 + $0x138] sm:$0xff] %v1696_v40  ;;  %v1699_v43 = vld [vmem:[#allocation2 + $0xe8] sm:$0xff] }
 0x270   : > { %1761 = vst [vmem:[%s2927_s6 + $0x140] sm:$0xff] %v1697_v41  ;;  %1762 = vst [vmem:[%s2927_s6 + $0x148] sm:$0xff] %v1698_v42  ;;  %v1700_v44 = vld [vmem:[#allocation2 + $0x78] sm:$0xff]  ;;  %v1701_v45 = vld [vmem:[#allocation2 + $0x70] sm:$0xff] }
 0x271   : > { %1763 = vst [vmem:[%s2927_s6 + $0x150] sm:$0xff] %v1699_v43  ;;  %1764 = vst [vmem:[%s2927_s6 + $0x158] sm:$0xff] %v1700_v44  ;;  %v1702_v46 = vld [vmem:[#allocation2 + $0x90] sm:$0xff]  ;;  %v1703_v47 = vld [vmem:[#allocation2 + $0x1d8] sm:$0xff] }
 0x272   : > { %1765 = vst [vmem:[%s2927_s6 + $0x160] sm:$0xff] %v1701_v45  ;;  %v1704_v48 = vld [vmem:[#allocation2 + $0xd0] sm:$0xff]  ;;  %1766 = vst [vmem:[%s2927_s6 + $0x168] sm:$0xff] %v1702_v46  ;;  %v1705_v49 = vld [vmem:[#allocation2 + $0xb8] sm:$0xff] }
 0x273   : > { %1767 = vst [vmem:[%s2927_s6 + $0x170] sm:$0xff] %v1703_v47  ;;  %1768 = vst [vmem:[%s2927_s6 + $0x178] sm:$0xff] %v1704_v48  ;;  %v1706_v50 = vld [vmem:[#allocation2 + $0x88] sm:$0xff]  ;;  %v1709_v53 = vld [vmem:[#allocation2 + $0x170] sm:$0xff] }
 0x274   : > { %v1707_v51 = vld [vmem:[#allocation2 + $0xa8] sm:$0xff]  ;;  %1769 = vst [vmem:[%s2927_s6 + $0x180] sm:$0xff] %v1705_v49  ;;  %1770 = vst [vmem:[%s2927_s6 + $0x188] sm:$0xff] %v1706_v50  ;;  %v1710_v54 = vld [vmem:[#allocation2 + $0x178] sm:$0xff] }
 0x275   : > { %1771 = vst [vmem:[%s2927_s6 + $0x190] sm:$0xff] %v1707_v51  ;;  %v1708_v52 = vld [vmem:[#allocation2 + $0x1c8] sm:$0xff]  ;;  %1773 = vst [vmem:[%s2927_s6 + $0x1a0] sm:$0xff] %v1709_v53  ;;  %v1712_v56 = vld [vmem:[#allocation2 + $0x190] sm:$0xff] }
 0x276   : > { %1772 = vst [vmem:[%s2927_s6 + $0x198] sm:$0xff] %v1708_v52  ;;  %1774 = vst [vmem:[%s2927_s6 + $0x1a8] sm:$0xff] %v1710_v54  ;;  %v1711_v55 = vld [vmem:[#allocation2 + $0x68] sm:$0xff]  ;;  %v1713_v57 = vld [vmem:[#allocation2 + $0x198] sm:$0xff] }
 0x277   : > { %1775 = vst [vmem:[%s2927_s6 + $0x1b0] sm:$0xff] %v1711_v55  ;;  %1776 = vst [vmem:[%s2927_s6 + $0x1b8] sm:$0xff] %v1712_v56  ;;  %v1714_v58 = vld [vmem:[#allocation2 + $0x38] sm:$0xff]  ;;  %v1715_v59 = vld [vmem:[#allocation2 + $0xc0] sm:$0xff] }
 0x278   : > { %1777 = vst [vmem:[%s2927_s6 + $0x1c0] sm:$0xff] %v1713_v57  ;;  %v1716_v60 = vld [vmem:[#allocation2 + $0x1c0] sm:$0xff]  ;;  %1778 = vst [vmem:[%s2927_s6 + $0x1c8] sm:$0xff] %v1714_v58  ;;  %v1717_v61 = vld [vmem:[#allocation2 + $0x158] sm:$0xff] }
 0x279   : > { %1779 = vst [vmem:[%s2927_s6 + $0x1d0] sm:$0xff] %v1715_v59  ;;  %1780 = vst [vmem:[%s2927_s6 + $0x1d8] sm:$0xff] %v1716_v60  ;;  %v1718_v62 = vld [vmem:[#allocation2 + $0x10] sm:$0xff]  ;;  %v1719_v63 = vld [vmem:[#allocation2 + $0x58] sm:$0xff] }
 0x27a   : > { %1781 = vst [vmem:[%s2927_s6 + $0x1e0] sm:$0xff] %v1717_v61  ;;  %1782 = vst [vmem:[%s2927_s6 + $0x1e8] sm:$0xff] %v1718_v62  ;;  %v1720_v0 = vld [vmem:[#allocation2 + $0xa0] sm:$0xff] }
 0x27b   : > { %1783 = vst [vmem:[%s2927_s6 + $0x1f0] sm:$0xff] %v1719_v63  ;;  %1784 = vst [vmem:[%s2927_s6 + $0x1f8] sm:$0xff] %v1720_v0 }
 0x27c PF: > { %s3338_s2 = sld [smem:[#allocation14_spill]]  ;;  %s1802_s27 = sshll.u32 %s2927_s6, 4  ;;  %s3190_s27 = int_to_ptr.vmem [resolvable:$true] %s1802_s27 }
 0x27d   : > { %s3339_s28 = sld [smem:[#allocation15_spill]]  ;;  %s3199_s3 = scalar_lea.sflag [#allocation5], %s230_s7 }
 0x27e   : > { %s3340_s22 = sld [smem:[#allocation24_spill]]  ;;  %s2484_s12 = scalar_lea.vmem %s3190_s27, 8192 }
 0x27f   : > { %p2485_p1 = scmp.ne.s32.totalorder %s3190_s27, %s2484_s12  ;;  %p3342_p0 = scmp.ne.s32.totalorder %s3324_s4, 0 }
 0x280   : > { %s2656_s6 = smov [#allocation8]  }
 0x281   : > { %p2486_p2 = pnand %p2485_p1, %p3342_p0  ;;  %s2488_s30 = sshll.u32 %s2656_s6, 4  ;;  %s2489_s30 = int_to_ptr.vmem [resolvable:$false] %s2488_s30 }
 0x282   : > { %s2074_s16 = sshll.u32 %s3338_s2, 1  ;;  %s2490_s1 = scalar_lea.vmem %s2489_s30, 16384 }
 0x283   : > { %s2081_s5 = sshll.u32 %s3339_s28, 7  ;;  %p2487_p13 = pneg %p2486_p2 }
 0x284   : > { %s1799_s18 = sadd.s32 %s2081_s5, %s2074_s16  ;;  %s3341_s26 = smov %s3340_s22 }
 0x285   : > { %s2076_s19 = sshll.u32 %s1799_s18, 7  ;;  %p2491_p6 = scmp.lt.s32.totalorder %s3190_s27, %s2489_s30 }
 0x286   : > { %s3195_s23 = scalar_lea.hbm %s3340_s22, %s2076_s19  ;;  %p2492_p10 = scmp.lt.s32.totalorder %s2490_s1, %s2484_s12 }
 0x288   : > { %p2493_p3 = por %p2492_p10, %p2491_p6 }
 0x28a   : > { %p2494_p5 = pnand %p2493_p3, %p2487_p13 }
 0x28c   : > { %2497 = shalt.err (!%p2494_p5)
}
 0x28d   : > { %s2498_s7 = scalar_lea.hbm %s3195_s23, 8192  ;;  %s2502_s16 = scalar_lea.hbm %s3341_s26, 32768 }
 0x28e   : > { %p2499_p4 = scmp.ne.s32.totalorder %s3195_s23, %s2498_s7  ;;  %p2503_p9 = scmp.lt.s32.totalorder %s3195_s23, %s3341_s26 }
 0x28f   : > { %p2504_p7 = scmp.lt.s32.totalorder %s2502_s16, %s2498_s7 }
 0x290   : > { %p2500_p11 = pnand %p2499_p4, %p3342_p0 }
 0x291   : > { %p2505_p8 = por %p2504_p7, %p2503_p9 }
 0x292   : > { %p2501_p12 = pneg %p2500_p11 }
 0x294   : > { %p2506_p1 = pnand %p2505_p8, %p2501_p12 }
 0x296   : > { %2509 = shalt.err (!%p2506_p1)
}
 0x297   : > { %s2657_s19 = smov 256   ;;  %s2658_s8 = smov 512  }
 0x298   : > { %s2659_s0 = smov 16  }
 0x299   : > { %2086 = dma.vmem_to_hbm [thread:$0]  (%p3342_p0), %s3190_s27, 8192, %s3195_s23, %s3199_s3, %s2657_s19, %s2658_s8, %s2659_s0  }
 0x29a PF: > { %p2100_p2 = scmp.ge.s32.totalorder %s2648_s24, 2  ;;  %s1817_s22 = sand.u32 1, %s2588_s9  }
 0x29b   : > { %p3343_p13 = scmp.ne.s32.totalorder %s3326_s25, 0  ;;  %s1818_s12 = scalar_lea.sflag [#allocation5], %s1817_s22 }
 0x29d   : > { %p2096_p6 = pnand %p2100_p2, %p3343_p13 }
 0x29f   : > { %p2097_p10 = pneg %p2096_p6 }
 0x2a1   : > { %2583 = dma.done.wait (%p2097_p10), %s1818_s12, 8192  }
 0x2a2   : > { %2585 = vsyncadd (%p2097_p10), %s1818_s12, 4294959104  ;;  %s21_s24 = sadd.s32 1, %s2648_s24   ;;  %s3345_s4 = sld [smem:[#allocation12_spill]] }
 0x2a3   : > { %p3227_p3 = scmp.ge.s32.totalorder %s21_s24, 10   ;;  %s3346_s19 = sld [smem:[#allocation16_spill]] }
 0x2a4   : > { %s3347_s25 = sld [smem:[#allocation17_spill]]  ;;  %s3351_s9 = smov %s2592_s10 }
 0x2a5   : > { %s3348_s27 = sld [smem:[#allocation18_spill]]  ;;  %s3352_s10 = smov %s2596_s11 }
 0x2a6   : > { %s3349_s22 = sld [smem:[#allocation20_spill]]  ;;  %s3353_s11 = smov %s2880_s15 }
 0x2a7   : > { %s3350_s23 = sld [smem:[#allocation21_spill]]  ;;  %s3354_s12 = smov %s2604_s13 }
 0x2a8   : > { %s3355_s13 = smov %s2608_s14  ;;  %s3356_s14 = smov %s2861_s29 }
 0x2a9   : > { %s3357_s15 = smov %s3345_s4  ;;  %s3358_s16 = smov %s2620_s17 }
 0x2aa   : > { %s3359_s17 = smov %s2877_s20  ;;  %s3360_s18 = smov %s2636_s21 }
 0x2ab   : > { %s3361_s20 = smov %s3347_s25  ;;  %s3362_s21 = smov %s3348_s27 }
 0x2ac   :  { %20 = sbr.rel (!%p3227_p3) target bundleno = 17 (0x11), region = 94 }
 0x2b1   :  { %1823 = vsyncpa [#allocation4], 1 }
 0x2b2   :  { %1825 = vsyncpa [#allocation4 + $0x1], 1 }
 0x2b3   :  { %1826 = vsyncpa [#allocation7], 1 }
 0x2b4   :  { %1828 = vsyncpa [#allocation7 + $0x1], 1 }
 0x2b5   :  { %1829 = vsyncpa [#allocation5], 1 }
 0x2b6   :  { %1831 = vsyncpa [#allocation5 + $0x1], 1 }

</bundles_post_ra>
